<compile_context>
chip_gen: v5e
topology: v5e:2x2
jax: 0.10.0
libtpu: 0.0.40
codegen_flags: <defaults>
</compile_context>

<pallas_src>
import math

import numpy as np

import jax
import jax.numpy as jnp
from jax.experimental import pallas as pl
from jax.experimental.pallas import tpu as pltpu  # noqa: F401  (TPU backend)

# Problem sizes consistent with the module.
B, S, H = 2, 8, 32
NUM_HEADS = 8
HEAD_DIM = H // NUM_HEADS
SPECIALTIES = ["cardiology", "neurology", "oncology", "emergency"]
NS = len(SPECIALTIES)
NUM_EXPERTS = 4
BS = B * S
H2 = H // 2
H4 = H // 4

# ---- packed slab layout: (W_ROWS, W_COLS) f32, every group start 128-aligned ----
A0 = 0                           # group A: Wq | Wk | (Wv@Wo fold per head)
QK_W = 2 * H                     # 64
A_W = QK_W + NUM_HEADS * H       # 320
BO_COL = A0 + A_W                # 320  (bias-only slot for bo, inside group-A padding)
B0 = 384                         # group B: ce_w1 | er_w1a | ur_w1      (width 56)
B_W = H + H2 + H4
C0 = 512                         # group C: ce_w2                       (width 4)
D0 = 640                         # group D: er_w1b | zero-pad for ur    (width 24)
D_W = H2 + H4
E0 = 768                         # group E: block-diag [er_w2 | ur_w2]  (width 5)
E_W = NUM_EXPERTS + 1
F0 = 896                         # group F: attn mask (BSxBS) + pool matrix (BxBS)
W_COLS = 1024
BIAS_ROW = H                     # row 32 carries all biases
W_ROWS = 40                      # 32 weight rows + 1 bias row, padded to sublane multiple

OUT_W = 128                      # lane-dense packed output row: [e_logits | probs | urg | pad]


def router_kernel(x_ref, w_ref, out_ref):
    x = x_ref[...]                                               # (B*S, H)

    # compile-time constants carried in the slab (no in-kernel iota/select work)
    mask = w_ref[0:BS, F0:F0 + BS]                               # (BS, BS) block-diag 0/-1e30
    pool = w_ref[BS:BS + B, F0:F0 + BS]                          # (B, BS)  per-batch mean

    # ---- fused projection: [Q | K | vout_0..7] in one MXU push (RHS width 320) ----
    proj = (jnp.dot(x, w_ref[0:H, A0:A0 + A_W],
                    preferred_element_type=jnp.float32)
            + w_ref[BIAS_ROW:BIAS_ROW + 1, A0:A0 + A_W])         # (B*S, 320)

    scale = 1.0 / math.sqrt(HEAD_DIM)
    attn_acc = jnp.zeros((BS, H), jnp.float32)
    for h in range(NUM_HEADS):                                   # static unroll (8 heads)
        lo = h * HEAD_DIM
        q_h = proj[:, lo:lo + HEAD_DIM]                          # (B*S, 4)
        k_h = proj[:, H + lo:H + lo + HEAD_DIM]                  # (B*S, 4)
        vout_h = proj[:, QK_W + h * H:QK_W + (h + 1) * H]        # (B*S, H)  = v_h @ Wo_h
        s = jax.lax.dot_general(q_h, k_h, (((1,), (1,)), ((), ())),
                                preferred_element_type=jnp.float32) * scale + mask
        s = s - jnp.max(s, axis=-1, keepdims=True)
        p = jnp.exp(s)
        p = p / jnp.sum(p, axis=-1, keepdims=True)
        # accumulate-form add -> MRB in-place accumulation on v7x
        attn_acc = attn_acc + jnp.dot(p, vout_h, preferred_element_type=jnp.float32)

    # ---- mean pool per batch element (pool matrix is constant data) + out-proj bias ----
    pooled = (jnp.dot(pool, attn_acc, preferred_element_type=jnp.float32)
              + w_ref[BIAS_ROW:BIAS_ROW + 1, BO_COL:BO_COL + H])  # (B, H)

    # ---- fused pooled-consumer matmul: ce_w1 | er_w1a | ur_w1 ----
    z = (jnp.dot(pooled, w_ref[0:H, B0:B0 + B_W],
                 preferred_element_type=jnp.float32)
         + w_ref[BIAS_ROW:BIAS_ROW + 1, B0:B0 + B_W])             # (B, 56)
    z1 = z[:, 0:H]                 # concept-extractor hidden (pre-ReLU)
    zz = z[:, H:H + D_W]           # [expert-router hidden (pooled part + er_b1) | urgency hidden]

    # ---- concept extractor -> specialty softmax ----
    h1 = jnp.maximum(z1, 0.0)
    spec_logits = (jnp.dot(h1, w_ref[0:H, C0:C0 + NS],
                           preferred_element_type=jnp.float32)
                   + w_ref[BIAS_ROW:BIAS_ROW + 1, C0:C0 + NS])    # (B, NS)
    sm = spec_logits - jnp.max(spec_logits, axis=-1, keepdims=True)
    se = jnp.exp(sm)
    spec_probs = se / jnp.sum(se, axis=-1, keepdims=True)         # (B, NS)

    # ---- expert-router + urgency hidden in one ReLU (er_w1b zero-padded over ur cols) ----
    tail_in = jnp.maximum(
        zz + jnp.dot(spec_probs, w_ref[0:NS, D0:D0 + D_W],
                     preferred_element_type=jnp.float32), 0.0)    # (B, 24) = [er_h | u_h]

    # ---- fused tail: [er_h | u_h] @ block-diag(er_w2, ur_w2) -> [e_logits | urg_logit] ----
    tail = (jnp.dot(tail_in, w_ref[0:D_W, E0:E0 + E_W],
                    preferred_element_type=jnp.float32)
            + w_ref[BIAS_ROW:BIAS_ROW + 1, E0:E0 + E_W])          # (B, 5)

    # ---- slice stores (no concatenate); pad lanes 9:128 intentionally left unwritten ----
    out_ref[:, 0:NUM_EXPERTS] = tail[:, 0:NUM_EXPERTS]
    out_ref[:, NUM_EXPERTS:NUM_EXPERTS + NS] = spec_probs
    out_ref[:, NUM_EXPERTS + NS:NUM_EXPERTS + NS + 1] = jax.nn.sigmoid(
        tail[:, NUM_EXPERTS:NUM_EXPERTS + 1])


def pack_params(p):
    """One-time packing of all 21 weights/biases plus the constant attention-mask
    and mean-pool matrices into a single lane-aligned (40, 1024) f32 slab.
    Runs once at init; the jitted forward only sees (x, slab)."""
    slab = jnp.zeros((W_ROWS, W_COLS), jnp.float32)

    # --- group A: Q | K | per-head (Wv @ Wo) fold, plus biases ---
    wq, wk, wv, wo = p["wq"], p["wk"], p["wv"], p["wo"]
    bq, bk, bv = p["bq"], p["bk"], p["bv"]
    vout, bvo = [], []
    for h in range(NUM_HEADS):
        lo = h * HEAD_DIM
        wo_h = wo[lo:lo + HEAD_DIM, :]                       # (4, H)
        vout.append(wv[:, lo:lo + HEAD_DIM] @ wo_h)          # (H, H)
        bvo.append(bv[:, lo:lo + HEAD_DIM] @ wo_h)           # (1, H)
    w_a = jnp.concatenate([wq, wk] + vout, axis=1)           # (H, 320)
    b_a = jnp.concatenate([bq, bk] + bvo, axis=1)            # (1, 320)
    slab = slab.at[0:H, A0:A0 + A_W].set(w_a)
    slab = slab.at[BIAS_ROW, A0:A0 + A_W].set(b_a[0])
    slab = slab.at[BIAS_ROW, BO_COL:BO_COL + H].set(p["bo"][0])

    # --- group B: ce_w1 | er_w1a | ur_w1 (+ biases) ---
    w_b = jnp.concatenate([p["ce_w1"], p["er_w1a"], p["ur_w1"]], axis=1)
    b_b = jnp.concatenate([p["ce_b1"], p["er_b1"], p["ur_b1"]], axis=1)
    slab = slab.at[0:H, B0:B0 + B_W].set(w_b)
    slab = slab.at[BIAS_ROW, B0:B0 + B_W].set(b_b[0])

    # --- group C: ce_w2 (+ ce_b2) ---
    slab = slab.at[0:H, C0:C0 + NS].set(p["ce_w2"])
    slab = slab.at[BIAS_ROW, C0:C0 + NS].set(p["ce_b2"][0])

    # --- group D: er_w1b (spec-prob part of expert-router layer 1); ur cols stay zero ---
    slab = slab.at[0:NS, D0:D0 + H2].set(p["er_w1b"])

    # --- group E: block-diagonal [er_w2 | ur_w2] (+ biases) ---
    slab = slab.at[0:H2, E0:E0 + NUM_EXPERTS].set(p["er_w2"])
    slab = slab.at[H2:H2 + H4, E0 + NUM_EXPERTS:E0 + E_W].set(p["ur_w2"])
    slab = slab.at[BIAS_ROW, E0:E0 + NUM_EXPERTS].set(p["er_b2"][0])
    slab = slab.at[BIAS_ROW, E0 + NUM_EXPERTS:E0 + E_W].set(p["ur_b2"][0])

    # --- group F: constant block-diagonal attention mask + per-batch mean-pool matrix ---
    tok_batch = np.arange(BS) // S
    mask = np.where(tok_batch[:, None] == tok_batch[None, :], 0.0, -1e30).astype(np.float32)
    pool = (np.arange(B)[:, None] == tok_batch[None, :]).astype(np.float32) / S
    slab = slab.at[0:BS, F0:F0 + BS].set(jnp.asarray(mask))
    slab = slab.at[BS:BS + B, F0:F0 + BS].set(jnp.asarray(pool))
    return slab


@jax.jit
def medical_router(x, slab):
    x2d = x.reshape(B * S, H)
    # Single program, no grid: whole problem fits in VMEM; default BlockSpecs give
    # exactly 2 input DMAs (x, slab) and 1 lane-dense output DMA, zero grid overhead.
    packed = pl.pallas_call(
        router_kernel,
        out_shape=jax.ShapeDtypeStruct((B, OUT_W), jnp.float32),
    )(x2d, slab)
    e_logits = packed[:, 0:NUM_EXPERTS]
    spec_probs = packed[:, NUM_EXPERTS:NUM_EXPERTS + NS]
    urg = packed[:, NUM_EXPERTS + NS:NUM_EXPERTS + NS + 1]
    # expert_logits.unsqueeze(1).expand(-1, S, -1): free broadcast in the caller.
    expert_logits = jnp.broadcast_to(e_logits[:, None, :], (B, S, NUM_EXPERTS))
    return expert_logits, spec_probs, urg


def make_params(key):
    ks = jax.random.split(key, 21)

    def wgt(k, shape, scale=0.05):
        return jax.random.normal(k, shape, jnp.float32) * scale

    return dict(
        # attention in_proj (split q/k/v) + out_proj
        wq=wgt(ks[0], (H, H)), wk=wgt(ks[1], (H, H)), wv=wgt(ks[2], (H, H)),
        bq=wgt(ks[3], (1, H)), bk=wgt(ks[4], (1, H)), bv=wgt(ks[5], (1, H)),
        wo=wgt(ks[6], (H, H)), bo=wgt(ks[7], (1, H)),
        # concept_extractor
        ce_w1=wgt(ks[8], (H, H)), ce_b1=wgt(ks[9], (1, H)),
        ce_w2=wgt(ks[10], (H, NS)), ce_b2=wgt(ks[11], (1, NS)),
        # expert_router (first Linear's weight split: rows for pooled / probs)
        er_w1a=wgt(ks[12], (H, H2)), er_w1b=wgt(ks[13], (NS, H2)),
        er_b1=wgt(ks[14], (1, H2)),
        er_w2=wgt(ks[15], (H2, NUM_EXPERTS)), er_b2=wgt(ks[16], (1, NUM_EXPERTS)),
        # urgency_detector
        ur_w1=wgt(ks[17], (H, H4)), ur_b1=wgt(ks[18], (1, H4)),
        ur_w2=wgt(ks[19], (H4, 1)), ur_b2=wgt(ks[20], (1, 1)),
    )


def reference(x, p):
    """Pure-JAX reference mirroring the PyTorch forward (dropout = eval)."""
    q = x @ p["wq"] + p["bq"][0]
    k = x @ p["wk"] + p["bk"][0]
    v = x @ p["wv"] + p["bv"][0]

    def split_heads(t):
        return t.reshape(B, S, NUM_HEADS, HEAD_DIM).transpose(0, 2, 1, 3)

    qh, kh, vh = split_heads(q), split_heads(k), split_heads(v)
    s = jnp.einsum("bhqd,bhkd->bhqk", qh, kh) / math.sqrt(HEAD_DIM)
    a = jax.nn.softmax(s, axis=-1)
    o = jnp.einsum("bhqk,bhkd->bhqd", a, vh).transpose(0, 2, 1, 3).reshape(B, S, H)
    attn = o @ p["wo"] + p["bo"][0]

    pooled = attn.mean(axis=1)
    h1 = jax.nn.relu(pooled @ p["ce_w1"] + p["ce_b1"][0])
    spec_logits = h1 @ p["ce_w2"] + p["ce_b2"][0]
    spec_probs = jax.nn.softmax(spec_logits, axis=-1)

    er_h = jax.nn.relu(pooled @ p["er_w1a"] + spec_probs @ p["er_w1b"] + p["er_b1"][0])
    e_logits = er_h @ p["er_w2"] + p["er_b2"][0]

    u_h = jax.nn.relu(pooled @ p["ur_w1"] + p["ur_b1"][0])
    urg = jax.nn.sigmoid(u_h @ p["ur_w2"] + p["ur_b2"][0])

    expert_logits = jnp.broadcast_to(e_logits[:, None, :], (B, S, NUM_EXPERTS))
    return expert_logits, spec_probs, urg


if __name__ == "__main__":
    key = jax.random.PRNGKey(0)
    pkey, xkey = jax.random.split(key)
    params = make_params(pkey)
    x = jax.random.normal(xkey, (B, S, H), jnp.float32)

    # Pack once at init (outside the per-call jitted path).
    slab = jax.block_until_ready(pack_params(params))

    outs = medical_router(x, slab)
    outs = jax.block_until_ready(outs)

    refs = reference(x, params)
    names = ("expert_logits", "specialty_probs", "urgency_score")
    for name, o, r in zip(names, outs, refs):
        assert o.shape == r.shape, (name, o.shape, r.shape)
        assert jnp.allclose(o, r, atol=1e-4, rtol=1e-4), name

    print("KERNEL_OK")
</pallas_src>

<mosaic_0001>
module attributes {stable_mosaic.version = 11 : i64} {
  func.func @router_kernel(%arg0: memref<16x32xf32, #tpu.memory_space<vmem>>, %arg1: memref<40x1024xf32, #tpu.memory_space<vmem>>, %arg2: memref<2x128xf32, #tpu.memory_space<vmem>>) attributes {dimension_semantics = [], scalar_prefetch = 0 : i64, scratch_operands = 0 : i64, tpu.core_type = #tpu.core_type<tc>} {
    %c0 = arith.constant 0 : index
    %c0_0 = arith.constant 0 : index
    %0 = vector.load %arg0[%c0, %c0_0] : memref<16x32xf32, #tpu.memory_space<vmem>>, vector<16x32xf32>
    %c0_1 = arith.constant 0 : index
    %c896 = arith.constant 896 : index
    %1 = vector.load %arg1[%c0_1, %c896] : memref<40x1024xf32, #tpu.memory_space<vmem>>, vector<16x16xf32>
    %c16 = arith.constant 16 : index
    %c896_2 = arith.constant 896 : index
    %2 = vector.load %arg1[%c16, %c896_2] : memref<40x1024xf32, #tpu.memory_space<vmem>>, vector<2x16xf32>
    %c0_3 = arith.constant 0 : index
    %c0_4 = arith.constant 0 : index
    %3 = vector.load %arg1[%c0_3, %c0_4] : memref<40x1024xf32, #tpu.memory_space<vmem>>, vector<32x320xf32>
    %cst = arith.constant dense<0.000000e+00> : vector<16x320xf32>
    %4 = tpu.matmul %0, %3, %cst {dimension_numbers = #tpu.dot_dimension_numbers<[1], [0], [0], [1], [0, 0, 1, 1], [], []>} : vector<16x32xf32>, vector<32x320xf32>, vector<16x320xf32> -> vector<16x320xf32>
    %c32 = arith.constant 32 : index
    %c0_5 = arith.constant 0 : index
    %5 = vector.load %arg1[%c32, %c0_5] : memref<40x1024xf32, #tpu.memory_space<vmem>>, vector<1x320xf32>
    %6 = vector.broadcast %5 : vector<1x320xf32> to vector<16x320xf32>
    %7 = arith.addf %4, %6 : vector<16x320xf32>
    %cst_6 = arith.constant 0.000000e+00 : f32
    %8 = vector.broadcast %cst_6 : f32 to vector<16x32xf32>
    %9 = vector.extract_strided_slice %7 {offsets = [0, 0], sizes = [16, 4], strides = [1, 1]} : vector<16x320xf32> to vector<16x4xf32>
    %10 = vector.extract_strided_slice %7 {offsets = [0, 32], sizes = [16, 4], strides = [1, 1]} : vector<16x320xf32> to vector<16x4xf32>
    %11 = vector.extract_strided_slice %7 {offsets = [0, 64], sizes = [16, 32], strides = [1, 1]} : vector<16x320xf32> to vector<16x32xf32>
    %cst_7 = arith.constant dense<0.000000e+00> : vector<16x16xf32>
    %12 = tpu.matmul %9, %10, %cst_7 {dimension_numbers = #tpu.dot_dimension_numbers<[1], [1], [0], [0], [0, 0, 1, 0], [], []>} : vector<16x4xf32>, vector<16x4xf32>, vector<16x16xf32> -> vector<16x16xf32>
    %cst_8 = arith.constant 5.000000e-01 : f32
    %13 = vector.broadcast %cst_8 : f32 to vector<16x16xf32>
    %14 = arith.mulf %12, %13 : vector<16x16xf32>
    %15 = arith.addf %14, %1 : vector<16x16xf32>
    %cst_9 = arith.constant dense<0xFF800000> : vector<16xf32>
    %16 = vector.multi_reduction <maximumf>, %15, %cst_9 [1] : vector<16x16xf32> to vector<16xf32>
    %17 = vector.shape_cast %16 : vector<16xf32> to vector<16x1xf32>
    %18 = vector.broadcast %17 : vector<16x1xf32> to vector<16x16xf32>
    %19 = arith.subf %15, %18 : vector<16x16xf32>
    %20 = math.exp %19 : vector<16x16xf32>
    %cst_10 = arith.constant dense<0.000000e+00> : vector<16xf32>
    %21 = vector.multi_reduction <add>, %20, %cst_10 [1] : vector<16x16xf32> to vector<16xf32>
    %22 = vector.shape_cast %21 : vector<16xf32> to vector<16x1xf32>
    %23 = vector.broadcast %22 : vector<16x1xf32> to vector<16x16xf32>
    %24 = arith.divf %20, %23 : vector<16x16xf32>
    %cst_11 = arith.constant dense<0.000000e+00> : vector<16x32xf32>
    %25 = tpu.matmul %24, %11, %cst_11 {dimension_numbers = #tpu.dot_dimension_numbers<[1], [0], [0], [1], [0, 0, 1, 1], [], []>} : vector<16x16xf32>, vector<16x32xf32>, vector<16x32xf32> -> vector<16x32xf32>
    %26 = arith.addf %8, %25 : vector<16x32xf32>
    %27 = vector.extract_strided_slice %7 {offsets = [0, 4], sizes = [16, 4], strides = [1, 1]} : vector<16x320xf32> to vector<16x4xf32>
    %28 = vector.extract_strided_slice %7 {offsets = [0, 36], sizes = [16, 4], strides = [1, 1]} : vector<16x320xf32> to vector<16x4xf32>
    %29 = vector.extract_strided_slice %7 {offsets = [0, 96], sizes = [16, 32], strides = [1, 1]} : vector<16x320xf32> to vector<16x32xf32>
    %cst_12 = arith.constant dense<0.000000e+00> : vector<16x16xf32>
    %30 = tpu.matmul %27, %28, %cst_12 {dimension_numbers = #tpu.dot_dimension_numbers<[1], [1], [0], [0], [0, 0, 1, 0], [], []>} : vector<16x4xf32>, vector<16x4xf32>, vector<16x16xf32> -> vector<16x16xf32>
    %cst_13 = arith.constant 5.000000e-01 : f32
    %31 = vector.broadcast %cst_13 : f32 to vector<16x16xf32>
    %32 = arith.mulf %30, %31 : vector<16x16xf32>
    %33 = arith.addf %32, %1 : vector<16x16xf32>
    %cst_14 = arith.constant dense<0xFF800000> : vector<16xf32>
    %34 = vector.multi_reduction <maximumf>, %33, %cst_14 [1] : vector<16x16xf32> to vector<16xf32>
    %35 = vector.shape_cast %34 : vector<16xf32> to vector<16x1xf32>
    %36 = vector.broadcast %35 : vector<16x1xf32> to vector<16x16xf32>
    %37 = arith.subf %33, %36 : vector<16x16xf32>
    %38 = math.exp %37 : vector<16x16xf32>
    %cst_15 = arith.constant dense<0.000000e+00> : vector<16xf32>
    %39 = vector.multi_reduction <add>, %38, %cst_15 [1] : vector<16x16xf32> to vector<16xf32>
    %40 = vector.shape_cast %39 : vector<16xf32> to vector<16x1xf32>
    %41 = vector.broadcast %40 : vector<16x1xf32> to vector<16x16xf32>
    %42 = arith.divf %38, %41 : vector<16x16xf32>
    %cst_16 = arith.constant dense<0.000000e+00> : vector<16x32xf32>
    %43 = tpu.matmul %42, %29, %cst_16 {dimension_numbers = #tpu.dot_dimension_numbers<[1], [0], [0], [1], [0, 0, 1, 1], [], []>} : vector<16x16xf32>, vector<16x32xf32>, vector<16x32xf32> -> vector<16x32xf32>
    %44 = arith.addf %26, %43 : vector<16x32xf32>
    %45 = vector.extract_strided_slice %7 {offsets = [0, 8], sizes = [16, 4], strides = [1, 1]} : vector<16x320xf32> to vector<16x4xf32>
    %46 = vector.extract_strided_slice %7 {offsets = [0, 40], sizes = [16, 4], strides = [1, 1]} : vector<16x320xf32> to vector<16x4xf32>
    %47 = vector.extract_strided_slice %7 {offsets = [0, 128], sizes = [16, 32], strides = [1, 1]} : vector<16x320xf32> to vector<16x32xf32>
    %cst_17 = arith.constant dense<0.000000e+00> : vector<16x16xf32>
    %48 = tpu.matmul %45, %46, %cst_17 {dimension_numbers = #tpu.dot_dimension_numbers<[1], [1], [0], [0], [0, 0, 1, 0], [], []>} : vector<16x4xf32>, vector<16x4xf32>, vector<16x16xf32> -> vector<16x16xf32>
    %cst_18 = arith.constant 5.000000e-01 : f32
    %49 = vector.broadcast %cst_18 : f32 to vector<16x16xf32>
    %50 = arith.mulf %48, %49 : vector<16x16xf32>
    %51 = arith.addf %50, %1 : vector<16x16xf32>
    %cst_19 = arith.constant dense<0xFF800000> : vector<16xf32>
    %52 = vector.multi_reduction <maximumf>, %51, %cst_19 [1] : vector<16x16xf32> to vector<16xf32>
    %53 = vector.shape_cast %52 : vector<16xf32> to vector<16x1xf32>
    %54 = vector.broadcast %53 : vector<16x1xf32> to vector<16x16xf32>
    %55 = arith.subf %51, %54 : vector<16x16xf32>
    %56 = math.exp %55 : vector<16x16xf32>
    %cst_20 = arith.constant dense<0.000000e+00> : vector<16xf32>
    %57 = vector.multi_reduction <add>, %56, %cst_20 [1] : vector<16x16xf32> to vector<16xf32>
    %58 = vector.shape_cast %57 : vector<16xf32> to vector<16x1xf32>
    %59 = vector.broadcast %58 : vector<16x1xf32> to vector<16x16xf32>
    %60 = arith.divf %56, %59 : vector<16x16xf32>
    %cst_21 = arith.constant dense<0.000000e+00> : vector<16x32xf32>
    %61 = tpu.matmul %60, %47, %cst_21 {dimension_numbers = #tpu.dot_dimension_numbers<[1], [0], [0], [1], [0, 0, 1, 1], [], []>} : vector<16x16xf32>, vector<16x32xf32>, vector<16x32xf32> -> vector<16x32xf32>
    %62 = arith.addf %44, %61 : vector<16x32xf32>
    %63 = vector.extract_strided_slice %7 {offsets = [0, 12], sizes = [16, 4], strides = [1, 1]} : vector<16x320xf32> to vector<16x4xf32>
    %64 = vector.extract_strided_slice %7 {offsets = [0, 44], sizes = [16, 4], strides = [1, 1]} : vector<16x320xf32> to vector<16x4xf32>
    %65 = vector.extract_strided_slice %7 {offsets = [0, 160], sizes = [16, 32], strides = [1, 1]} : vector<16x320xf32> to vector<16x32xf32>
    %cst_22 = arith.constant dense<0.000000e+00> : vector<16x16xf32>
    %66 = tpu.matmul %63, %64, %cst_22 {dimension_numbers = #tpu.dot_dimension_numbers<[1], [1], [0], [0], [0, 0, 1, 0], [], []>} : vector<16x4xf32>, vector<16x4xf32>, vector<16x16xf32> -> vector<16x16xf32>
    %cst_23 = arith.constant 5.000000e-01 : f32
    %67 = vector.broadcast %cst_23 : f32 to vector<16x16xf32>
    %68 = arith.mulf %66, %67 : vector<16x16xf32>
    %69 = arith.addf %68, %1 : vector<16x16xf32>
    %cst_24 = arith.constant dense<0xFF800000> : vector<16xf32>
    %70 = vector.multi_reduction <maximumf>, %69, %cst_24 [1] : vector<16x16xf32> to vector<16xf32>
    %71 = vector.shape_cast %70 : vector<16xf32> to vector<16x1xf32>
    %72 = vector.broadcast %71 : vector<16x1xf32> to vector<16x16xf32>
    %73 = arith.subf %69, %72 : vector<16x16xf32>
    %74 = math.exp %73 : vector<16x16xf32>
    %cst_25 = arith.constant dense<0.000000e+00> : vector<16xf32>
    %75 = vector.multi_reduction <add>, %74, %cst_25 [1] : vector<16x16xf32> to vector<16xf32>
    %76 = vector.shape_cast %75 : vector<16xf32> to vector<16x1xf32>
    %77 = vector.broadcast %76 : vector<16x1xf32> to vector<16x16xf32>
    %78 = arith.divf %74, %77 : vector<16x16xf32>
    %cst_26 = arith.constant dense<0.000000e+00> : vector<16x32xf32>
    %79 = tpu.matmul %78, %65, %cst_26 {dimension_numbers = #tpu.dot_dimension_numbers<[1], [0], [0], [1], [0, 0, 1, 1], [], []>} : vector<16x16xf32>, vector<16x32xf32>, vector<16x32xf32> -> vector<16x32xf32>
    %80 = arith.addf %62, %79 : vector<16x32xf32>
    %81 = vector.extract_strided_slice %7 {offsets = [0, 16], sizes = [16, 4], strides = [1, 1]} : vector<16x320xf32> to vector<16x4xf32>
    %82 = vector.extract_strided_slice %7 {offsets = [0, 48], sizes = [16, 4], strides = [1, 1]} : vector<16x320xf32> to vector<16x4xf32>
    %83 = vector.extract_strided_slice %7 {offsets = [0, 192], sizes = [16, 32], strides = [1, 1]} : vector<16x320xf32> to vector<16x32xf32>
    %cst_27 = arith.constant dense<0.000000e+00> : vector<16x16xf32>
    %84 = tpu.matmul %81, %82, %cst_27 {dimension_numbers = #tpu.dot_dimension_numbers<[1], [1], [0], [0], [0, 0, 1, 0], [], []>} : vector<16x4xf32>, vector<16x4xf32>, vector<16x16xf32> -> vector<16x16xf32>
    %cst_28 = arith.constant 5.000000e-01 : f32
    %85 = vector.broadcast %cst_28 : f32 to vector<16x16xf32>
    %86 = arith.mulf %84, %85 : vector<16x16xf32>
    %87 = arith.addf %86, %1 : vector<16x16xf32>
    %cst_29 = arith.constant dense<0xFF800000> : vector<16xf32>
    %88 = vector.multi_reduction <maximumf>, %87, %cst_29 [1] : vector<16x16xf32> to vector<16xf32>
    %89 = vector.shape_cast %88 : vector<16xf32> to vector<16x1xf32>
    %90 = vector.broadcast %89 : vector<16x1xf32> to vector<16x16xf32>
    %91 = arith.subf %87, %90 : vector<16x16xf32>
    %92 = math.exp %91 : vector<16x16xf32>
    %cst_30 = arith.constant dense<0.000000e+00> : vector<16xf32>
    %93 = vector.multi_reduction <add>, %92, %cst_30 [1] : vector<16x16xf32> to vector<16xf32>
    %94 = vector.shape_cast %93 : vector<16xf32> to vector<16x1xf32>
    %95 = vector.broadcast %94 : vector<16x1xf32> to vector<16x16xf32>
    %96 = arith.divf %92, %95 : vector<16x16xf32>
    %cst_31 = arith.constant dense<0.000000e+00> : vector<16x32xf32>
    %97 = tpu.matmul %96, %83, %cst_31 {dimension_numbers = #tpu.dot_dimension_numbers<[1], [0], [0], [1], [0, 0, 1, 1], [], []>} : vector<16x16xf32>, vector<16x32xf32>, vector<16x32xf32> -> vector<16x32xf32>
    %98 = arith.addf %80, %97 : vector<16x32xf32>
    %99 = vector.extract_strided_slice %7 {offsets = [0, 20], sizes = [16, 4], strides = [1, 1]} : vector<16x320xf32> to vector<16x4xf32>
    %100 = vector.extract_strided_slice %7 {offsets = [0, 52], sizes = [16, 4], strides = [1, 1]} : vector<16x320xf32> to vector<16x4xf32>
    %101 = vector.extract_strided_slice %7 {offsets = [0, 224], sizes = [16, 32], strides = [1, 1]} : vector<16x320xf32> to vector<16x32xf32>
    %cst_32 = arith.constant dense<0.000000e+00> : vector<16x16xf32>
    %102 = tpu.matmul %99, %100, %cst_32 {dimension_numbers = #tpu.dot_dimension_numbers<[1], [1], [0], [0], [0, 0, 1, 0], [], []>} : vector<16x4xf32>, vector<16x4xf32>, vector<16x16xf32> -> vector<16x16xf32>
    %cst_33 = arith.constant 5.000000e-01 : f32
    %103 = vector.broadcast %cst_33 : f32 to vector<16x16xf32>
    %104 = arith.mulf %102, %103 : vector<16x16xf32>
    %105 = arith.addf %104, %1 : vector<16x16xf32>
    %cst_34 = arith.constant dense<0xFF800000> : vector<16xf32>
    %106 = vector.multi_reduction <maximumf>, %105, %cst_34 [1] : vector<16x16xf32> to vector<16xf32>
    %107 = vector.shape_cast %106 : vector<16xf32> to vector<16x1xf32>
    %108 = vector.broadcast %107 : vector<16x1xf32> to vector<16x16xf32>
    %109 = arith.subf %105, %108 : vector<16x16xf32>
    %110 = math.exp %109 : vector<16x16xf32>
    %cst_35 = arith.constant dense<0.000000e+00> : vector<16xf32>
    %111 = vector.multi_reduction <add>, %110, %cst_35 [1] : vector<16x16xf32> to vector<16xf32>
    %112 = vector.shape_cast %111 : vector<16xf32> to vector<16x1xf32>
    %113 = vector.broadcast %112 : vector<16x1xf32> to vector<16x16xf32>
    %114 = arith.divf %110, %113 : vector<16x16xf32>
    %cst_36 = arith.constant dense<0.000000e+00> : vector<16x32xf32>
    %115 = tpu.matmul %114, %101, %cst_36 {dimension_numbers = #tpu.dot_dimension_numbers<[1], [0], [0], [1], [0, 0, 1, 1], [], []>} : vector<16x16xf32>, vector<16x32xf32>, vector<16x32xf32> -> vector<16x32xf32>
    %116 = arith.addf %98, %115 : vector<16x32xf32>
    %117 = vector.extract_strided_slice %7 {offsets = [0, 24], sizes = [16, 4], strides = [1, 1]} : vector<16x320xf32> to vector<16x4xf32>
    %118 = vector.extract_strided_slice %7 {offsets = [0, 56], sizes = [16, 4], strides = [1, 1]} : vector<16x320xf32> to vector<16x4xf32>
    %119 = vector.extract_strided_slice %7 {offsets = [0, 256], sizes = [16, 32], strides = [1, 1]} : vector<16x320xf32> to vector<16x32xf32>
    %cst_37 = arith.constant dense<0.000000e+00> : vector<16x16xf32>
    %120 = tpu.matmul %117, %118, %cst_37 {dimension_numbers = #tpu.dot_dimension_numbers<[1], [1], [0], [0], [0, 0, 1, 0], [], []>} : vector<16x4xf32>, vector<16x4xf32>, vector<16x16xf32> -> vector<16x16xf32>
    %cst_38 = arith.constant 5.000000e-01 : f32
    %121 = vector.broadcast %cst_38 : f32 to vector<16x16xf32>
    %122 = arith.mulf %120, %121 : vector<16x16xf32>
    %123 = arith.addf %122, %1 : vector<16x16xf32>
    %cst_39 = arith.constant dense<0xFF800000> : vector<16xf32>
    %124 = vector.multi_reduction <maximumf>, %123, %cst_39 [1] : vector<16x16xf32> to vector<16xf32>
    %125 = vector.shape_cast %124 : vector<16xf32> to vector<16x1xf32>
    %126 = vector.broadcast %125 : vector<16x1xf32> to vector<16x16xf32>
    %127 = arith.subf %123, %126 : vector<16x16xf32>
    %128 = math.exp %127 : vector<16x16xf32>
    %cst_40 = arith.constant dense<0.000000e+00> : vector<16xf32>
    %129 = vector.multi_reduction <add>, %128, %cst_40 [1] : vector<16x16xf32> to vector<16xf32>
    %130 = vector.shape_cast %129 : vector<16xf32> to vector<16x1xf32>
    %131 = vector.broadcast %130 : vector<16x1xf32> to vector<16x16xf32>
    %132 = arith.divf %128, %131 : vector<16x16xf32>
    %cst_41 = arith.constant dense<0.000000e+00> : vector<16x32xf32>
    %133 = tpu.matmul %132, %119, %cst_41 {dimension_numbers = #tpu.dot_dimension_numbers<[1], [0], [0], [1], [0, 0, 1, 1], [], []>} : vector<16x16xf32>, vector<16x32xf32>, vector<16x32xf32> -> vector<16x32xf32>
    %134 = arith.addf %116, %133 : vector<16x32xf32>
    %135 = vector.extract_strided_slice %7 {offsets = [0, 28], sizes = [16, 4], strides = [1, 1]} : vector<16x320xf32> to vector<16x4xf32>
    %136 = vector.extract_strided_slice %7 {offsets = [0, 60], sizes = [16, 4], strides = [1, 1]} : vector<16x320xf32> to vector<16x4xf32>
    %137 = vector.extract_strided_slice %7 {offsets = [0, 288], sizes = [16, 32], strides = [1, 1]} : vector<16x320xf32> to vector<16x32xf32>
    %cst_42 = arith.constant dense<0.000000e+00> : vector<16x16xf32>
    %138 = tpu.matmul %135, %136, %cst_42 {dimension_numbers = #tpu.dot_dimension_numbers<[1], [1], [0], [0], [0, 0, 1, 0], [], []>} : vector<16x4xf32>, vector<16x4xf32>, vector<16x16xf32> -> vector<16x16xf32>
    %cst_43 = arith.constant 5.000000e-01 : f32
    %139 = vector.broadcast %cst_43 : f32 to vector<16x16xf32>
    %140 = arith.mulf %138, %139 : vector<16x16xf32>
    %141 = arith.addf %140, %1 : vector<16x16xf32>
    %cst_44 = arith.constant dense<0xFF800000> : vector<16xf32>
    %142 = vector.multi_reduction <maximumf>, %141, %cst_44 [1] : vector<16x16xf32> to vector<16xf32>
    %143 = vector.shape_cast %142 : vector<16xf32> to vector<16x1xf32>
    %144 = vector.broadcast %143 : vector<16x1xf32> to vector<16x16xf32>
    %145 = arith.subf %141, %144 : vector<16x16xf32>
    %146 = math.exp %145 : vector<16x16xf32>
    %cst_45 = arith.constant dense<0.000000e+00> : vector<16xf32>
    %147 = vector.multi_reduction <add>, %146, %cst_45 [1] : vector<16x16xf32> to vector<16xf32>
    %148 = vector.shape_cast %147 : vector<16xf32> to vector<16x1xf32>
    %149 = vector.broadcast %148 : vector<16x1xf32> to vector<16x16xf32>
    %150 = arith.divf %146, %149 : vector<16x16xf32>
    %cst_46 = arith.constant dense<0.000000e+00> : vector<16x32xf32>
    %151 = tpu.matmul %150, %137, %cst_46 {dimension_numbers = #tpu.dot_dimension_numbers<[1], [0], [0], [1], [0, 0, 1, 1], [], []>} : vector<16x16xf32>, vector<16x32xf32>, vector<16x32xf32> -> vector<16x32xf32>
    %152 = arith.addf %134, %151 : vector<16x32xf32>
    %cst_47 = arith.constant dense<0.000000e+00> : vector<2x32xf32>
    %153 = tpu.matmul %2, %152, %cst_47 {dimension_numbers = #tpu.dot_dimension_numbers<[1], [0], [0], [1], [0, 0, 1, 1], [], []>} : vector<2x16xf32>, vector<16x32xf32>, vector<2x32xf32> -> vector<2x32xf32>
    %c32_48 = arith.constant 32 : index
    %c320 = arith.constant 320 : index
    %154 = vector.load %arg1[%c32_48, %c320] : memref<40x1024xf32, #tpu.memory_space<vmem>>, vector<1x32xf32>
    %155 = vector.broadcast %154 : vector<1x32xf32> to vector<2x32xf32>
    %156 = arith.addf %153, %155 : vector<2x32xf32>
    %c0_49 = arith.constant 0 : index
    %c384 = arith.constant 384 : index
    %157 = vector.load %arg1[%c0_49, %c384] : memref<40x1024xf32, #tpu.memory_space<vmem>>, vector<32x56xf32>
    %cst_50 = arith.constant dense<0.000000e+00> : vector<2x56xf32>
    %158 = tpu.matmul %156, %157, %cst_50 {dimension_numbers = #tpu.dot_dimension_numbers<[1], [0], [0], [1], [0, 0, 1, 1], [], []>} : vector<2x32xf32>, vector<32x56xf32>, vector<2x56xf32> -> vector<2x56xf32>
    %c32_51 = arith.constant 32 : index
    %c384_52 = arith.constant 384 : index
    %159 = vector.load %arg1[%c32_51, %c384_52] : memref<40x1024xf32, #tpu.memory_space<vmem>>, vector<1x56xf32>
    %160 = vector.broadcast %159 : vector<1x56xf32> to vector<2x56xf32>
    %161 = arith.addf %158, %160 : vector<2x56xf32>
    %162 = vector.extract_strided_slice %161 {offsets = [0, 0], sizes = [2, 32], strides = [1, 1]} : vector<2x56xf32> to vector<2x32xf32>
    %163 = vector.extract_strided_slice %161 {offsets = [0, 32], sizes = [2, 24], strides = [1, 1]} : vector<2x56xf32> to vector<2x24xf32>
    %cst_53 = arith.constant 0.000000e+00 : f32
    %164 = vector.broadcast %cst_53 : f32 to vector<2x32xf32>
    %165 = arith.maximumf %162, %164 : vector<2x32xf32>
    %c0_54 = arith.constant 0 : index
    %c512 = arith.constant 512 : index
    %166 = vector.load %arg1[%c0_54, %c512] : memref<40x1024xf32, #tpu.memory_space<vmem>>, vector<32x4xf32>
    %cst_55 = arith.constant dense<0.000000e+00> : vector<2x4xf32>
    %167 = tpu.matmul %165, %166, %cst_55 {dimension_numbers = #tpu.dot_dimension_numbers<[1], [0], [0], [1], [0, 0, 1, 1], [], []>} : vector<2x32xf32>, vector<32x4xf32>, vector<2x4xf32> -> vector<2x4xf32>
    %c32_56 = arith.constant 32 : index
    %c512_57 = arith.constant 512 : index
    %168 = vector.load %arg1[%c32_56, %c512_57] : memref<40x1024xf32, #tpu.memory_space<vmem>>, vector<1x4xf32>
    %169 = vector.broadcast %168 : vector<1x4xf32> to vector<2x4xf32>
    %170 = arith.addf %167, %169 : vector<2x4xf32>
    %cst_58 = arith.constant dense<0xFF800000> : vector<2xf32>
    %171 = vector.multi_reduction <maximumf>, %170, %cst_58 [1] : vector<2x4xf32> to vector<2xf32>
    %172 = vector.shape_cast %171 : vector<2xf32> to vector<2x1xf32>
    %173 = vector.broadcast %172 : vector<2x1xf32> to vector<2x4xf32>
    %174 = arith.subf %170, %173 : vector<2x4xf32>
    %175 = math.exp %174 : vector<2x4xf32>
    %cst_59 = arith.constant dense<0.000000e+00> : vector<2xf32>
    %176 = vector.multi_reduction <add>, %175, %cst_59 [1] : vector<2x4xf32> to vector<2xf32>
    %177 = vector.shape_cast %176 : vector<2xf32> to vector<2x1xf32>
    %178 = vector.broadcast %177 : vector<2x1xf32> to vector<2x4xf32>
    %179 = arith.divf %175, %178 : vector<2x4xf32>
    %c0_60 = arith.constant 0 : index
    %c640 = arith.constant 640 : index
    %180 = vector.load %arg1[%c0_60, %c640] : memref<40x1024xf32, #tpu.memory_space<vmem>>, vector<4x24xf32>
    %cst_61 = arith.constant dense<0.000000e+00> : vector<2x24xf32>
    %181 = tpu.matmul %179, %180, %cst_61 {dimension_numbers = #tpu.dot_dimension_numbers<[1], [0], [0], [1], [0, 0, 1, 1], [], []>} : vector<2x4xf32>, vector<4x24xf32>, vector<2x24xf32> -> vector<2x24xf32>
    %182 = arith.addf %163, %181 : vector<2x24xf32>
    %cst_62 = arith.constant 0.000000e+00 : f32
    %183 = vector.broadcast %cst_62 : f32 to vector<2x24xf32>
    %184 = arith.maximumf %182, %183 : vector<2x24xf32>
    %c0_63 = arith.constant 0 : index
    %c768 = arith.constant 768 : index
    %185 = vector.load %arg1[%c0_63, %c768] : memref<40x1024xf32, #tpu.memory_space<vmem>>, vector<24x5xf32>
    %cst_64 = arith.constant dense<0.000000e+00> : vector<2x5xf32>
    %186 = tpu.matmul %184, %185, %cst_64 {dimension_numbers = #tpu.dot_dimension_numbers<[1], [0], [0], [1], [0, 0, 1, 1], [], []>} : vector<2x24xf32>, vector<24x5xf32>, vector<2x5xf32> -> vector<2x5xf32>
    %c32_65 = arith.constant 32 : index
    %c768_66 = arith.constant 768 : index
    %187 = vector.load %arg1[%c32_65, %c768_66] : memref<40x1024xf32, #tpu.memory_space<vmem>>, vector<1x5xf32>
    %188 = vector.broadcast %187 : vector<1x5xf32> to vector<2x5xf32>
    %189 = arith.addf %186, %188 : vector<2x5xf32>
    %190 = vector.extract_strided_slice %189 {offsets = [0, 0], sizes = [2, 4], strides = [1, 1]} : vector<2x5xf32> to vector<2x4xf32>
    %c0_67 = arith.constant 0 : index
    %c0_68 = arith.constant 0 : index
    %191 = vector.load %arg2[%c0_67, %c0_68] : memref<2x128xf32, #tpu.memory_space<vmem>>, vector<2x4xf32>
    tpu.vector_store %arg2[%c0_67, %c0_68], %190 {strides = array<i32>} : memref<2x128xf32, #tpu.memory_space<vmem>>, vector<2x4xf32>,
    %c0_69 = arith.constant 0 : index
    %c4 = arith.constant 4 : index
    %192 = vector.load %arg2[%c0_69, %c4] : memref<2x128xf32, #tpu.memory_space<vmem>>, vector<2x4xf32>
    tpu.vector_store %arg2[%c0_69, %c4], %179 {strides = array<i32>} : memref<2x128xf32, #tpu.memory_space<vmem>>, vector<2x4xf32>,
    %193 = vector.extract_strided_slice %189 {offsets = [0, 4], sizes = [2, 1], strides = [1, 1]} : vector<2x5xf32> to vector<2x1xf32>
    %194 = arith.negf %193 : vector<2x1xf32>
    %195 = math.exp %194 : vector<2x1xf32>
    %cst_70 = arith.constant 1.000000e+00 : f32
    %196 = vector.broadcast %cst_70 : f32 to vector<2x1xf32>
    %197 = arith.addf %196, %195 : vector<2x1xf32>
    %198 = arith.divf %196, %197 : vector<2x1xf32>
    %c0_71 = arith.constant 0 : index
    %c8 = arith.constant 8 : index
    %199 = vector.load %arg2[%c0_71, %c8] : memref<2x128xf32, #tpu.memory_space<vmem>>, vector<2x1xf32>
    tpu.vector_store %arg2[%c0_71, %c8], %198 {strides = array<i32>} : memref<2x128xf32, #tpu.memory_space<vmem>>, vector<2x1xf32>,
    return
  }
}

</mosaic_0001>

<bundles_post_ra>
// kernel: medical_router.1
= control target key start
LH: loop header
LB: loop body
LE: loop exit
PB: predicated region body
PF: predicated region fallthrough
CT: control target
= control target key end

     0   :  { %7 = vsyncpa [#allocation3], 0  ;;  %s2054_s0 = inlined_call_operand.hbm [shape: f32[16,32], index: 0, kind: input, shape index: {}]   ;;  %s2055_s1 = inlined_call_operand.hbm [shape: f32[40,1024], index: 1, kind: input, shape index: {}]   ;;  %s2056_s2 = inlined_call_operand.vmem [shape: f32[2,128], index: 2, kind: output, shape index: {}]  }
   0x1   :  { %s13_s11 = sshll.u32 %s2054_s0, 4  ;;  %s14_s11 = int_to_ptr.hbm [resolvable:$true] %s13_s11 }
   0x2   :  { %8 = vsyncpa [#allocation5], 0  ;;  %s1606_s12 = smov [#allocation2]   ;;  %s26_s16 = sshll.u32 %s2055_s1, 4  ;;  %s27_s16 = int_to_ptr.hbm [resolvable:$true] %s26_s16 }
   0x3   :  { %s15_s13 = sshll.u32 %s1606_s12, 4  ;;  %s1607_s17 = smov 128   ;;  %s16_s13 = int_to_ptr.vmem [resolvable:$true] %s15_s13 }
   0x4   :  { %s1608_s18 = smov 8   ;;  %s1609_s19 = smov [#allocation4]  }
   0x5   :  { %21 = dma.hbm_to_vmem [thread:$0]  %s14_s11, 256, %s16_s13, [#allocation3], %s1607_s17, %s1607_s17, %s1608_s18  }
   0x6   :  { %s28_s20 = sshll.u32 %s1609_s19, 4  ;;  %s1610_s21 = smov 1024   ;;  %s29_s20 = int_to_ptr.vmem [resolvable:$true] %s28_s20 }
   0x7   :  { %s1611_s22 = smov 64  }
   0x8   :  { %34 = dma.hbm_to_vmem [thread:$0]  %s27_s16, 5120, %s29_s20, [#allocation5], %s1610_s21, %s1610_s21, %s1611_s22  }
   0x9   :  { %1602 = dma.done.wait [#allocation3], 256  }
   0xa   :  { %1603 = vsyncadd [#allocation3], 4294967040 }
   0xb   :  { %1604 = dma.done.wait [#allocation5], 5120  }
   0xc   :  { %1605 = vsyncadd [#allocation5], 4294962176  ;;  %v57_v0 = vld [vmem:[#allocation4 + $0xc0] sm:$0xff]  ;;  %v1651_v4 = vld [vmem:[#allocation2] sm:$0xff]  ;;  %vm69_vm0 = vcmask 261120   ;;  %s1612_s0 = smov 84  }
   0xd   :  { %v54_v1 = vld [vmem:[#allocation4 + $0x80] sm:$0xff]  ;;  %88 = vmatpush.msra.mxu0 %v57_v0  ;;  %v1655_v5 = vld [vmem:[#allocation2 + $0x8] sm:$0xff]  ;;  %s1613_s1 = smov 124   ;;  %s1614_s23 = smov 92   ;;  %v58_v13 = vld [vmem:[#allocation4 + $0xc8] sm:$0xff]  ;;  %vm151_vm1 = vcmask 31744  }
   0xe   :  { %v51_v2 = vld [vmem:[#allocation4 + $0x40] sm:$0xff]  ;;  %s1615_s24 = smov 116   ;;  %s1616_s25 = smov 32   ;;  %v55_v14 = vld [vmem:[#allocation4 + $0x88] sm:$0xff]  ;;  %111 = vmatpush.msra.mxu1 %v58_v13  ;;  %v1721_v35 = vld [vmem:[#allocation4 + $0x38] sm:$0xff]  ;;  %vm187_vm2 = vcmask 130048  }
   0xf   :  { %89 = vmatpush.msra.mxu0 %v54_v1  ;;  %v48_v3 = vld [vmem:[#allocation4] sm:$0xff]  ;;  %s1617_s26 = smov 96   ;;  %s1618_s27 = smov 120   ;;  %v52_v15 = vld [vmem:[#allocation4 + $0x48] sm:$0xff]  ;;  %v1725_v40 = vld [vmem:[#allocation4 + $0x78] sm:$0xff] }
  0x10   :  { %v1659_v6 = vld [vmem:[#allocation4 + $0x100] ss:$8 sm:$0x7]  ;;  %s1619_s28 = smov 88   ;;  %s1620_s29 = smov 80   ;;  %112 = vmatpush.msra.mxu1 %v55_v14 }
  0x11   :  { %90 = vmatpush.msra.mxu0 %v51_v2  ;;  %v63_v7 = vperm.slane %v1659_v6, 0  ;;  %s1621_s30 = smov 76   ;;  %v49_v16 = vld [vmem:[#allocation4 + $0x8] sm:$0xff]  ;;  %s1622_s3 = smov 112  }
  0x12   :  { %113 = vmatpush.msra.mxu1 %v52_v15  ;;  %s1623_s4 = smov 72   ;;  %s1624_s5 = smov 100  }
  0x13   :  { %91 = vmatpush.msra.mxu0 %v48_v3  ;;  %s1625_s6 = smov 108   ;;  %s1626_s7 = smov 68  }
  0x14   :  { %1368 = vmatmul.msk.f32.vlgmr.msra.gmra.mxu0 %vm69_vm0, %v1651_v4  ;;  %114 = vmatpush.msra.mxu1 %v49_v16  ;;  %s1627_s8 = smov 104   ;;  %s1628_s9 = smov 4  }
  0x15   :  { %1370 = vmatmul.msk.f32.vlgmr.msra.gmra.mxu1 %vm69_vm0, %v1651_v4 }
  0x1c   :  { %1369 = vmatmul.msk.f32.gmra.mxu0 %vm69_vm0, %v1655_v5 }
  0x1d   :  { %1371 = vmatmul.msk.f32.gmra.mxu1 %vm69_vm0, %v1655_v5 }
  0x91   :  { %v93_v8 = vpop.f32.mrf.mxu0 }
  0x92   :  { %v1662_v9 = vadd.f32 %v93_v8, %v63_v7 }
  0x94   :  { %523 = vrot.lane.b32.xlu2 %v1662_v9, %s1612_s0  ;;  %236 = vrot.lane.b32.xlu1 %v1662_v9, %s1613_s1 }
  0x99   :  { %v96_v10 = vpop.f32.mrf.mxu0 }
  0x9a   :  { %v1666_v11 = vadd.f32 %v96_v10, %v63_v7 }
  0x9c   :  { %242 = vrot.lane.b32.xlu0 %v1666_v11, %s1614_s23  ;;  %519 = vrot.lane.b32.xlu2 %v1662_v9, %s1615_s24  ;;  %v1673_v12 = vpack.i.bf16 %v1662_v9, %v1666_v11 }
  0x9d   :  { %238 = vrot.lane.b32.xlu1 %v1666_v11, %s1613_s1 }
  0xa4   :  { %1453 = vrot.lane.b32.xlu2 %v1673_v12, %s1616_s25  ;;  %240 = vrot.lane.b32.xlu0 %v1662_v9, %s1614_s23 }
  0xa5   :  { %147 = vrot.lane.b32.xlu1 %v1662_v9, %s1617_s26 }
  0xac   :  { %521 = vrot.lane.b32.xlu2 %v1666_v11, %s1615_s24  ;;  %399 = vrot.lane.b32.xlu0 %v1666_v11, %s1618_s27 }
  0xad   :  { %401 = vrot.lane.b32.xlu1 %v1662_v9, %s1619_s28 }
  0xb5   :  { %397 = vrot.lane.b32.xlu1 %v1662_v9, %s1618_s27 }
  0xbd   :  { %149 = vrot.lane.b32.xlu1 %v1666_v11, %s1617_s26 }
  0xc5   :  { %403 = vrot.lane.b32.xlu1 %v1666_v11, %s1619_s28 }
  0xcd   :  { %525 = vrot.lane.b32.xlu1 %v1666_v11, %s1612_s0 }
  0xd5   :  { %655 = vrot.lane.b32.xlu1 %v1666_v11, %s1620_s29 }
  0xdd   :  { %783 = vrot.lane.b32.xlu1 %v1666_v11, %s1621_s30 }
  0xe5   :  { %649 = vrot.lane.b32.xlu1 %v1662_v9, %s1622_s3 }
  0xed   :  { %911 = vrot.lane.b32.xlu1 %v1666_v11, %s1623_s4 }
  0xee   :  { %v524_v17 = vpop.permute.xlu2 %523 }
  0xf5   :  { %909 = vrot.lane.b32.xlu1 %v1662_v9, %s1623_s4 }
  0xf6   :  { %v1700_v18 = vpop.permute.xlu2 %519 }
  0xfd   :  { %1027 = vrot.lane.b32.xlu1 %v1662_v9, %s1624_s5 }
  0xfe   :  { %v1454_v19 = vpop.permute.xlu2 %1453 }
  0xff   :  { %v1455_v20 = vunpack.i.l.bf16 %v1454_v19  ;;  %v1456_v21 = vunpack.i.h.bf16 %v1454_v19 }
 0x101   :  { %353 = vmatpush.msrb.mxu1 %v1455_v20 }
 0x103   :  { %354 = vmatpush.msrb.mxu1 %v1456_v21 }
 0x106   :  { %v237_v22 = vpop.permute.xlu1 %236  ;;  %v1735_v49 = vpop.permute.xlu2 %521 }
 0x10e   :  { %v243_v23 = vpop.permute.xlu0 %242 }
 0x10f   :  { %v239_v24 = vpop.permute.xlu1 %238  ;;  %1378 = vmatpush.xpose.msk.msrb.mxu0 %vm151_vm1, %v243_v23 }
 0x116   :  { %v241_v25 = vpop.permute.xlu0 %240 }
 0x117   :  { %v148_v26 = vpop.permute.xlu1 %147  ;;  %1379 = vmatpush.xpose.msk.msrb.mxu0 %vm151_vm1, %v241_v25 }
 0x11a   :  { %1380 = vmatmul.msk.f32.vlgmr.msrb.gmra.mxu0 %vm151_vm1, %v237_v22 }
 0x11e   :  { %v400_v33 = vpop.permute.xlu0 %399 }
 0x11f   :  { %v402_v27 = vpop.permute.xlu1 %401 }
 0x122   :  { %1381 = vmatmul.msk.f32.gmra.mxu0 %vm151_vm1, %v239_v24 }
 0x127   :  { %v398_v28 = vpop.permute.xlu1 %397 }
 0x12f   :  { %v150_v29 = vpop.permute.xlu1 %149 }
 0x130   :  { %1374 = vmatpush.xpose.msk.msra.mxu3 %vm151_vm1, %v150_v29 }
 0x134   :  { %1375 = vmatpush.xpose.msk.msra.mxu3 %vm151_vm1, %v148_v26 }
 0x137   :  { %1376 = vmatmul.msk.f32.vlgmr.msra.gmra.mxu3 %vm151_vm1, %v1662_v9  ;;  %v404_v30 = vpop.permute.xlu1 %403 }
 0x138   :  { %1386 = vmatpush.xpose.msk.msrb.mxu3 %vm151_vm1, %v404_v30 }
 0x13c   :  { %1387 = vmatpush.xpose.msk.msrb.mxu3 %vm151_vm1, %v402_v27 }
 0x13f   :  { %1377 = vmatmul.msk.f32.gmra.mxu3 %vm151_vm1, %v1666_v11  ;;  %v526_v31 = vpop.permute.xlu1 %525 }
 0x140   :  { %1392 = vmatpush.xpose.msk.msra.mxu1 %vm151_vm1, %v526_v31 }
 0x144   :  { %1393 = vmatpush.xpose.msk.msra.mxu1 %vm151_vm1, %v524_v17 }
 0x147   :  { %1388 = vmatmul.msk.f32.vlgmr.msrb.gmra.mxu3 %vm151_vm1, %v398_v28  ;;  %v656_v32 = vpop.permute.xlu1 %655 }
 0x148   :  { %1398 = vmatpush.xpose.msk.msra.mxu3 %vm151_vm1, %v656_v32 }
 0x14f   :  { %1389 = vmatmul.msk.f32.gmra.mxu3 %vm151_vm1, %v400_v33  ;;  %v1733_v48 = vpop.permute.xlu1 %783 }
 0x157   :  { %v650_v51 = vpop.permute.xlu1 %649 }
 0x15f   :  { %v912_v57 = vpop.permute.xlu1 %911 }
 0x167   :  { %v910_v63 = vpop.permute.xlu1 %909 }
 0x16f   :  { %v1761_v2 = vpop.permute.xlu1 %1027 }
 0x197   :  { %v269_v34 = vpop.f32.mrf.mxu0 }
 0x198   :  { %v275_v36 = vmul.f32 0.5, %v269_v34 }
 0x19a   :  { %v277_v37 = vadd.f32 %v275_v36, %v1721_v35 }
 0x19c   :  { %v279_v38 = vsel %vm187_vm2, %v277_v37, -inf }
 0x19d   :  { %280 = vmax.xlane.f32.xlu2 %v279_v38 }
 0x19f   :  { %v272_v39 = vpop.f32.mrf.mxu0 }
 0x1a0   :  { %v276_v41 = vmul.f32 0.5, %v272_v39 }
 0x1a2   :  { %v278_v42 = vadd.f32 %v276_v41, %v1725_v40 }
 0x1a4   :  { %v282_v43 = vsel %vm187_vm2, %v278_v42, -inf }
 0x1a5   :  { %283 = vmax.xlane.f32.xlu2 %v282_v43 }
 0x1ba   :  { %v177_v44 = vpop.f32.mrf.mxu3 }
 0x1bb   :  { %v183_v45 = vmul.f32 0.5, %v177_v44 }
 0x1bd   :  { %653 = vrot.lane.b32.xlu2 %v1662_v9, %s1620_s29  ;;  %v185_v46 = vadd.f32 %v183_v45, %v1721_v35 }
 0x1bf   :  { %v188_v47 = vsel %vm187_vm2, %v185_v46, -inf }
 0x1c0   :  { %189 = vmax.xlane.f32.xlu1 %v188_v47 }
 0x1c2   :  { %v180_v0 = vpop.f32.mrf.mxu3 }
 0x1c3   :  { %v184_v13 = vmul.f32 0.5, %v180_v0 }
 0x1ca   :  { %v430_v1 = vpop.f32.mrf.mxu3 }
 0x1cb   :  { %v436_v16 = vmul.f32 0.5, %v430_v1 }
 0x1cd   :  { %v1776_v20 = vadd.f32 %v436_v16, %v1721_v35 }
 0x1cf   :  { %v440_v22 = vsel %vm187_vm2, %v1776_v20, -inf }
 0x1d2   :  { %v433_v7 = vpop.f32.mrf.mxu3 }
 0x1d3   :  { %v437_v10 = vmul.f32 0.5, %v433_v7 }
 0x1d5   :  { %v1764_v15 = vadd.f32 %v437_v10, %v1725_v40 }
 0x210   :  { %v281_v50 = vpop.xlane.xlu2 %280 }
 0x211   :  { %v285_v52 = vsub.f32 %v277_v37, %v281_v50 }
 0x213   :  { %v287_v53 = vmul.f32 1.442695, %v285_v52 }
 0x215   :  { %1482 = vpow2.f32 %v287_v53 }
 0x218   :  { %v284_v54 = vpop.xlane.xlu2 %283 }
 0x219   :  { %v286_v55 = vsub.f32 %v278_v42, %v284_v54 }
 0x21b   :  { %v1737_v56 = vpop.eup %1482  ;;  %v289_v58 = vmul.f32 1.442695, %v286_v55 }
 0x21c   :  { %v291_v59 = vsel %vm187_vm2, %v1737_v56, 0.0 }
 0x21d   :  { %1484 = vpow2.f32 %v289_v58  ;;  %292 = vadd.xlane.f32.xlu0 %v291_v59 }
 0x220   :  { %v654_v60 = vpop.permute.xlu2 %653 }
 0x221   :  { %1399 = vmatpush.xpose.msk.msra.mxu3 %vm151_vm1, %v654_v60 }
 0x223   :  { %v1743_v61 = vpop.eup %1484 }
 0x224   :  { %1400 = vmatmul.msk.f32.vlgmr.msra.gmra.mxu3 %vm151_vm1, %v650_v51  ;;  %v294_v62 = vsel %vm187_vm2, %v1743_v61, 0.0 }
 0x225   :  { %1410 = vmatpush.xpose.msk.msrb.mxu3 %vm151_vm1, %v912_v57  ;;  %295 = vadd.xlane.f32.xlu2 %v294_v62  ;;  %v116_v62 = vpop.f32.mrf.mxu1 }
 0x229   :  { %1411 = vmatpush.xpose.msk.msrb.mxu3 %vm151_vm1, %v910_v63  ;;  %v64_v63 = vperm.slane %v1659_v6, 1 }
 0x22d   :  { %v119_v0 = vpop.f32.mrf.mxu1 }
 0x22e   :  { %v120_v1 = vadd.f32 %v119_v0, %v64_v63 }
 0x230   :  { %508 = vmatpush.msra.mxu0 %v120_v1 }
 0x231   :  { %781 = vrot.lane.b32.xlu0 %v1662_v9, %s1621_s30 }
 0x233   :  { %v190_v3 = vpop.xlane.xlu1 %189 }
 0x234   :  { %v194_v8 = vsub.f32 %v185_v46, %v190_v3 }
 0x236   :  { %v196_v14 = vmul.f32 1.442695, %v194_v8 }
 0x238   :  { %1486 = vpow2.f32 %v196_v14 }
 0x239   :  { %651 = vrot.lane.b32.xlu0 %v1666_v11, %s1622_s3 }
 0x23d   :  { %777 = vrot.lane.b32.xlu2 %v1662_v9, %s1625_s6 }
 0x23e   :  { %v1773_v19 = vpop.eup %1486 }
 0x23f   :  { %v200_v21 = vsel %vm187_vm2, %v1773_v19, 0.0 }
 0x241   :  { %1033 = vrot.lane.b32.xlu0 %v1666_v11, %s1626_s7 }
 0x245   :  { %779 = vrot.lane.b32.xlu2 %v1666_v11, %s1625_s6 }
 0x249   :  { %905 = vrot.lane.b32.xlu0 %v1662_v9, %s1627_s8 }
 0x24d   :  { %1031 = vrot.lane.b32.xlu2 %v1662_v9, %s1626_s7  ;;  %v1767_v9 = vadd.f32 %v184_v13, %v1725_v40 }
 0x24f   :  { %v191_v17 = vsel %vm187_vm2, %v1767_v9, -inf }
 0x251   :  { %1029 = vrot.lane.b32.xlu0 %v1666_v11, %s1624_s5 }
 0x255   :  { %907 = vrot.lane.b32.xlu2 %v1666_v11, %s1627_s8  ;;  %v443_v11 = vsel %vm187_vm2, %v1764_v15, -inf }
 0x27b   :  { %444 = vmax.xlane.f32.xlu0 %v443_v11 }
 0x27e   :  { %192 = vmax.xlane.f32.xlu2 %v191_v17 }
 0x283   :  { %201 = vadd.xlane.f32.xlu0 %v200_v21 }
 0x286   :  { %441 = vmax.xlane.f32.xlu2 %v440_v22 }
 0x290   :  { %v293_v23 = vpop.xlane.xlu0 %292 }
 0x291   :  { %1488 = vrcp.f32 %v293_v23  ;;  %v308_v28 = vand.u32 2147483648, %v293_v23  ;;  %v306_v30 = vand.u32 2147483647, %v293_v23  ;;  %vm302_vm4 = vweird.f32 %v293_v23 }
 0x293   :  { %v309_v33 = vor.u32 1.1754944e-38, %v308_v28  ;;  %vm307_vm6 = vcmp.eq.f32.partialorder %v306_v30, 8.507059e+37 }
 0x297   :  { %v1489_v24 = vpop.eup %1488 }
 0x298   :  { %v298_v25 = vmul.f32 %v1489_v24, %v293_v23  ;;  %v296_v26 = vpop.xlane.xlu2 %295  ;;  %vm303_vm3 = vweird.f32 %v1489_v24 }
 0x299   :  { %1490 = vrcp.f32 %v296_v26  ;;  %vm304_vm5 = vmor %vm302_vm4, %vm303_vm3  ;;  %v323_v41 = vand.u32 2147483648, %v296_v26  ;;  %v321_v45 = vand.u32 2147483647, %v296_v26  ;;  %vm317_vm8 = vweird.f32 %v296_v26 }
 0x29a   :  { %v299_v27 = vsub.f32 1.0, %v298_v25 }
 0x29b   :  { %v324_v47 = vor.u32 1.1754944e-38, %v323_v41  ;;  %vm322_vm10 = vcmp.eq.f32.partialorder %v321_v45, 8.507059e+37  ;;  %v59_v41 = vld [vmem:[#allocation4 + $0xd0] sm:$0xff] }
 0x29c   :  { %v300_v29 = vmul.f32 %v1489_v24, %v299_v27  ;;  %134 = vmatpush.msra.mxu2 %v59_v41  ;;  %v53_v45 = vld [vmem:[#allocation4 + $0x50] sm:$0xff] }
 0x29e   :  { %v301_v31 = vadd.f32 %v1489_v24, %v300_v29 }
 0x29f   :  { %v1491_v32 = vpop.eup %1490 }
 0x2a0   :  { %v313_v34 = vmul.f32 %v1491_v32, %v296_v26  ;;  %v305_v36 = vsel %vm304_vm5, %v1489_v24, %v301_v31  ;;  %v778_v44 = vpop.permute.xlu2 %777  ;;  %vm318_vm7 = vweird.f32 %v1491_v32 }
 0x2a1   :  { %v310_v37 = vsel %vm307_vm6, %v309_v33, %v305_v36  ;;  %vm319_vm9 = vmor %vm317_vm8, %vm318_vm7 }
 0x2a2   :  { %v314_v38 = vsub.f32 1.0, %v313_v34  ;;  %v311_v39 = vmul.f32 %v1737_v56, %v310_v37 }
 0x2a3   :  { %v782_v42 = vpop.permute.xlu0 %781 }
 0x2a4   :  { %v315_v43 = vmul.f32 %v1491_v32, %v314_v38  ;;  %1382 = vmatmul.msk.f32.vlgmr.msrb.gmra.mxu1 %vm187_vm2, %v311_v39 }
 0x2a5   :  { %1404 = vmatpush.xpose.msk.msrb.mxu1 %vm151_vm1, %v1733_v48 }
 0x2a6   :  { %v316_v46 = vadd.f32 %v1491_v32, %v315_v43 }
 0x2a7   :  { %v682_v50 = vpop.f32.mrf.mxu3 }
 0x2a8   :  { %v688_v51 = vmul.f32 0.5, %v682_v50  ;;  %v320_v52 = vsel %vm319_vm9, %v1491_v32, %v316_v46  ;;  %v780_v57 = vpop.permute.xlu2 %779 }
 0x2a9   :  { %1405 = vmatpush.xpose.msk.msrb.mxu1 %vm151_vm1, %v782_v42  ;;  %v325_v53 = vsel %vm322_vm10, %v324_v47, %v320_v52  ;;  %v56_v42 = vld [vmem:[#allocation4 + $0x90] sm:$0xff] }
 0x2aa   :  { %v326_v54 = vmul.f32 %v1743_v61, %v325_v53  ;;  %v690_v55 = vadd.f32 %v688_v51, %v1721_v35  ;;  %135 = vmatpush.msra.mxu2 %v56_v42  ;;  %v50_v51 = vld [vmem:[#allocation4 + $0x10] sm:$0xff] }
 0x2ab   :  { %v652_v56 = vpop.permute.xlu0 %651 }
 0x2ac   :  { %1383 = vmatmul.msk.f32.gmra.mxu1 %vm187_vm2, %v326_v54  ;;  %1401 = vmatmul.msk.f32.gmra.mxu3 %vm151_vm1, %v652_v56  ;;  %v692_v48 = vsel %vm187_vm2, %v690_v55, -inf }
 0x2ad   :  { %693 = vmax.xlane.f32.xlu1 %v692_v48  ;;  %136 = vmatpush.msra.mxu2 %v53_v45 }
 0x2af   :  { %137 = vmatpush.msra.mxu2 %v50_v51 }
 0x2b0   :  { %v1032_v59 = vpop.permute.xlu2 %1031  ;;  %1372 = vmatmul.msk.f32.vlgmr.msra.gmra.mxu2 %vm69_vm0, %v1651_v4 }
 0x2b3   :  { %v1034_v58 = vpop.permute.xlu0 %1033 }
 0x2b4   :  { %1394 = vmatmul.msk.f32.vlgmr.msra.gmra.mxu1 %vm151_vm1, %v1700_v18 }
 0x2b5   :  { %1416 = vmatpush.xpose.msk.msra.mxu1 %vm151_vm1, %v1034_v58 }
 0x2b8   :  { %v908_v61 = vpop.permute.xlu2 %907  ;;  %1373 = vmatmul.msk.f32.gmra.mxu2 %vm69_vm0, %v1655_v5 }
 0x2b9   :  { %1417 = vmatpush.xpose.msk.msra.mxu1 %vm151_vm1, %v1032_v59 }
 0x2bb   :  { %v906_v60 = vpop.permute.xlu0 %905 }
 0x2bc   :  { %1395 = vmatmul.msk.f32.gmra.mxu1 %vm151_vm1, %v1735_v49  ;;  %1412 = vmatmul.msk.f32.vlgmr.msrb.gmra.mxu3 %vm151_vm1, %v906_v60  ;;  %v117_v49 = vadd.f32 %v116_v62, %v64_v63 }
 0x2be   :  { %509 = vmatpush.msra.mxu0 %v117_v49  ;;  %v1806_v3 = vpack.i.bf16 %v117_v49, %v120_v1 }
 0x2c3   :  { %v1030_v18 = vpop.permute.xlu0 %1029 }
 0x2c4   :  { %1406 = vmatmul.msk.f32.vlgmr.msrb.gmra.mxu1 %vm151_vm1, %v778_v44  ;;  %1413 = vmatmul.msk.f32.gmra.mxu3 %vm151_vm1, %v908_v61 }
 0x2cc   :  { %1407 = vmatmul.msk.f32.gmra.mxu1 %vm151_vm1, %v780_v57 }
 0x2d4   :  { %1418 = vmatmul.msk.f32.vlgmr.msra.gmra.mxu1 %vm151_vm1, %v1761_v2 }
 0x2dc   :  { %1419 = vmatmul.msk.f32.gmra.mxu1 %vm151_vm1, %v1030_v18 }
 0x2ee   :  { %v445_v59 = vpop.xlane.xlu0 %444 }
 0x2ef   :  { %v447_v18 = vsub.f32 %v1764_v15, %v445_v59 }
 0x2f1   :  { %v193_v10 = vpop.xlane.xlu2 %192  ;;  %v450_v0 = vmul.f32 1.442695, %v447_v18 }
 0x2f2   :  { %v195_v2 = vsub.f32 %v1767_v9, %v193_v10 }
 0x2f4   :  { %v198_v11 = vmul.f32 1.442695, %v195_v2 }
 0x2f6   :  { %1492 = vpow2.f32 %v198_v11 }
 0x2f9   :  { %v442_v46 = vpop.xlane.xlu2 %441 }
 0x2fa   :  { %v446_v54 = vsub.f32 %v1776_v20, %v442_v46 }
 0x2fc   :  { %v1823_v29 = vpop.eup %1492  ;;  %v448_v58 = vmul.f32 1.442695, %v446_v54 }
 0x2fd   :  { %v203_v31 = vsel %vm187_vm2, %v1823_v29, 0.0 }
 0x320   :  { %v694_v17 = vpop.xlane.xlu1 %693 }
 0x321   :  { %v1808_v7 = vpop.f32.mrf.mxu1  ;;  %v698_v25 = vsub.f32 %v690_v55, %v694_v17 }
 0x323   :  { %v700_v26 = vmul.f32 1.442695, %v698_v25 }
 0x325   :  { %1494 = vpow2.f32 %v700_v26 }
 0x326   :  { %1496 = vpow2.f32 %v448_v58 }
 0x327   :  { %1498 = vpow2.f32 %v450_v0 }
 0x329   :  { %v1810_v8 = vpop.f32.mrf.mxu1 }
 0x32b   :  { %v1835_v38 = vpop.eup %1494 }
 0x32c   :  { %v704_v43 = vsel %vm187_vm2, %v1835_v38, 0.0  ;;  %v1867_v49 = vpop.eup %1496 }
 0x32d   :  { %v452_v10 = vsel %vm187_vm2, %v1867_v49, 0.0  ;;  %v1876_v2 = vpop.eup %1498 }
 0x32f   :  { %v685_v13 = vpop.f32.mrf.mxu3 }
 0x330   :  { %v689_v14 = vmul.f32 0.5, %v685_v13  ;;  %v455_v13 = vsel %vm187_vm2, %v1876_v2, 0.0 }
 0x331   :  { %v552_v16 = vpop.f32.mrf.mxu1 }
 0x332   :  { %v558_v21 = vmul.f32 0.5, %v552_v16  ;;  %v1814_v22 = vadd.f32 %v689_v14, %v1725_v40 }
 0x334   :  { %v695_v23 = vsel %vm187_vm2, %v1814_v22, -inf  ;;  %v1819_v24 = vadd.f32 %v558_v21, %v1721_v35 }
 0x335   :  { %696 = vmax.xlane.f32.xlu2 %v695_v23 }
 0x336   :  { %v562_v9 = vsel %vm187_vm2, %v1819_v24, -inf }
 0x337   :  { %563 = vmax.xlane.f32.xlu0 %v562_v9 }
 0x339   :  { %v555_v27 = vpop.f32.mrf.mxu1 }
 0x33a   :  { %v559_v28 = vmul.f32 0.5, %v555_v27 }
 0x33c   :  { %v1826_v30 = vadd.f32 %v559_v28, %v1725_v40 }
 0x33e   :  { %v565_v32 = vsel %vm187_vm2, %v1826_v30, -inf }
 0x33f   :  { %204 = vadd.xlane.f32.xlu0 %v203_v31  ;;  %566 = vmax.xlane.f32.xlu1 %v565_v32  ;;  %v938_v33 = vpop.f32.mrf.mxu3 }
 0x340   :  { %v944_v34 = vmul.f32 0.5, %v938_v33 }
 0x341   :  { %v810_v36 = vpop.f32.mrf.mxu1 }
 0x342   :  { %v1833_v37 = vadd.f32 %v944_v34, %v1721_v35  ;;  %v816_v55 = vmul.f32 0.5, %v810_v36 }
 0x344   :  { %v948_v39 = vsel %vm187_vm2, %v1833_v37, -inf  ;;  %v1855_v20 = vadd.f32 %v816_v55, %v1721_v35 }
 0x345   :  { %949 = vmax.xlane.f32.xlu2 %v948_v39 }
 0x346   :  { %v820_v62 = vsel %vm187_vm2, %v1855_v20, -inf }
 0x347   :  { %705 = vadd.xlane.f32.xlu1 %v704_v43  ;;  %v941_v44 = vpop.f32.mrf.mxu3 }
 0x348   :  { %v945_v47 = vmul.f32 0.5, %v941_v44 }
 0x349   :  { %v813_v50 = vpop.f32.mrf.mxu1 }
 0x34a   :  { %v817_v52 = vmul.f32 0.5, %v813_v50  ;;  %v1842_v53 = vadd.f32 %v945_v47, %v1725_v40 }
 0x34c   :  { %v951_v56 = vsel %vm187_vm2, %v1842_v53, -inf  ;;  %v1848_v48 = vadd.f32 %v817_v52, %v1725_v40 }
 0x34d   :  { %952 = vmax.xlane.f32.xlu2 %v951_v56 }
 0x34e   :  { %v823_v57 = vsel %vm187_vm2, %v1848_v48, -inf }
 0x34f   :  { %824 = vmax.xlane.f32.xlu0 %v823_v57 }
 0x351   :  { %v1060_v60 = vpop.f32.mrf.mxu1 }
 0x352   :  { %v1066_v61 = vmul.f32 0.5, %v1060_v60 }
 0x354   :  { %v1861_v63 = vadd.f32 %v1066_v61, %v1721_v35 }
 0x355   :  { %821 = vmax.xlane.f32.xlu2 %v820_v62 }
 0x356   :  { %v1070_v4 = vsel %vm187_vm2, %v1861_v63, -inf }
 0x357   :  { %1071 = vmax.xlane.f32.xlu1 %v1070_v4 }
 0x359   :  { %v1063_v1 = vpop.f32.mrf.mxu1 }
 0x35a   :  { %v1067_v15 = vmul.f32 0.5, %v1063_v1 }
 0x35c   :  { %v1872_v35 = vadd.f32 %v1067_v15, %v1725_v40  ;;  %v1888_v40 = vpop.xlane.xlu0 %201 }
 0x35d   :  { %453 = vadd.xlane.f32.xlu2 %v452_v10  ;;  %v217_v57 = vand.u32 2147483648, %v1888_v40  ;;  %vm211_vm12 = vweird.f32 %v1888_v40  ;;  %v215_v59 = vand.u32 2147483647, %v1888_v40 }
 0x35e   :  { %v1073_v5 = vsel %vm187_vm2, %v1872_v35, -inf }
 0x35f   :  { %1074 = vmax.xlane.f32.xlu1 %v1073_v5  ;;  %v218_v4 = vor.u32 1.1754944e-38, %v217_v57  ;;  %vm216_vm14 = vcmp.eq.f32.partialorder %v215_v59, 8.507059e+37 }
 0x363   :  { %1458 = vrot.lane.b32.xlu0 %v1673_v12, %s1611_s22 }
 0x365   :  { %456 = vadd.xlane.f32.xlu2 %v455_v13 }
 0x37d   :  { %1463 = vrot.lane.b32.xlu2 %v1806_v3, %s1617_s26 }
 0x385   :  { %1468 = vrot.lane.b32.xlu2 %v1806_v3, %s1616_s25 }
 0x38d   :  { %1473 = vrot.lane.b32.xlu2 %v1806_v3, %s1611_s22 }
 0x3a8   :  { %v697_v12 = vpop.xlane.xlu2 %696 }
 0x3a9   :  { %v699_v45 = vsub.f32 %v1814_v22, %v697_v12 }
 0x3aa   :  { %v564_v14 = vpop.xlane.xlu0 %563 }
 0x3ab   :  { %v568_v11 = vsub.f32 %v1819_v24, %v564_v14  ;;  %v702_v54 = vmul.f32 1.442695, %v699_v45 }
 0x3ad   :  { %v570_v16 = vmul.f32 1.442695, %v568_v11 }
 0x3af   :  { %1500 = vpow2.f32 %v570_v16 }
 0x3b2   :  { %v567_v17 = vpop.xlane.xlu1 %566  ;;  %v1897_v26 = vpop.xlane.xlu0 %204 }
 0x3b3   :  { %v569_v21 = vsub.f32 %v1826_v30, %v567_v17  ;;  %v232_v11 = vand.u32 2147483648, %v1897_v26  ;;  %vm226_vm3 = vweird.f32 %v1897_v26 }
 0x3b5   :  { %v1892_v23 = vpop.eup %1500  ;;  %v572_v25 = vmul.f32 1.442695, %v569_v21 }
 0x3b6   :  { %v574_v9 = vsel %vm187_vm2, %v1892_v23, 0.0 }
 0x3b7   :  { %1502 = vpow2.f32 %v572_v25  ;;  %575 = vadd.xlane.f32.xlu1 %v574_v9  ;;  %v230_v25 = vand.u32 2147483647, %v1897_v26 }
 0x3b8   :  { %v950_v3 = vpop.xlane.xlu2 %949  ;;  %1504 = vrcp.f32 %v1888_v40 }
 0x3b9   :  { %1506 = vrcp.f32 %v1897_v26  ;;  %v954_v60 = vsub.f32 %v1833_v37, %v950_v3  ;;  %vm231_vm6 = vcmp.eq.f32.partialorder %v230_v25, 8.507059e+37 }
 0x3ba   :  { %v1919_v55 = vpop.xlane.xlu1 %705 }
 0x3bb   :  { %v956_v15 = vmul.f32 1.442695, %v954_v60 }
 0x3bd   :  { %v1899_v24 = vpop.eup %1502 }
 0x3be   :  { %v577_v27 = vsel %vm187_vm2, %v1899_v24, 0.0  ;;  %v1505_v28 = vpop.eup %1504 }
 0x3bf   :  { %578 = vadd.xlane.f32.xlu1 %v577_v27  ;;  %v207_v33 = vmul.f32 %v1505_v28, %v1888_v40  ;;  %v1907_v42 = vpop.eup %1506  ;;  %vm212_vm11 = vweird.f32 %v1505_v28 }
 0x3c0   :  { %v953_v30 = vpop.xlane.xlu2 %952  ;;  %v222_v50 = vmul.f32 %v1907_v42, %v1897_v26  ;;  %vm1926_vm13 = vmor %vm211_vm12, %vm212_vm11  ;;  %vm227_vm15 = vweird.f32 %v1907_v42  ;;  %v233_v26 = vor.u32 1.1754944e-38, %v232_v11 }
 0x3c1   :  { %v955_v31 = vsub.f32 %v1842_v53, %v953_v30  ;;  %v208_v41 = vsub.f32 1.0, %v207_v33  ;;  %vm1950_vm4 = vmor %vm226_vm3, %vm227_vm15  ;;  %vm715_vm15 = vweird.f32 %v1919_v55 }
 0x3c2   :  { %v825_v32 = vpop.xlane.xlu0 %824 }
 0x3c3   :  { %v958_v34 = vmul.f32 1.442695, %v955_v31  ;;  %v827_v36 = vsub.f32 %v1848_v48, %v825_v32  ;;  %v209_v47 = vmul.f32 %v1505_v28, %v208_v41  ;;  %v223_v48 = vsub.f32 1.0, %v222_v50 }
 0x3c5   :  { %1508 = vpow2.f32 %v958_v34  ;;  %v830_v39 = vmul.f32 1.442695, %v827_v36  ;;  %v210_v56 = vadd.f32 %v1505_v28, %v209_v47  ;;  %v224_v18 = vmul.f32 %v1907_v42, %v223_v48 }
 0x3c7   :  { %1510 = vpow2.f32 %v830_v39  ;;  %v214_v62 = vsel %vm1926_vm13, %v1505_v28, %v210_v56  ;;  %v225_v40 = vadd.f32 %v1907_v42, %v224_v18  ;;  %v139_v18 = vpop.f32.mrf.mxu2 }
 0x3c8   :  { %v822_v43 = vpop.xlane.xlu2 %821  ;;  %v219_v37 = vsel %vm216_vm14, %v218_v4, %v214_v62 }
 0x3c9   :  { %v826_v44 = vsub.f32 %v1855_v20, %v822_v43  ;;  %v220_v21 = vmul.f32 %v1773_v19, %v219_v37  ;;  %v229_v19 = vsel %vm1950_vm4, %v1907_v42, %v225_v40  ;;  %v721_v40 = vand.u32 2147483648, %v1919_v55 }
 0x3ca   :  { %v1072_v10 = vpop.xlane.xlu1 %1071  ;;  %v234_v36 = vsel %vm231_vm6, %v233_v26, %v229_v19 }
 0x3cb   :  { %v1911_v46 = vpop.eup %1508  ;;  %v828_v51 = vmul.f32 1.442695, %v826_v44  ;;  %v1076_v28 = vsub.f32 %v1861_v63, %v1072_v10 }
 0x3cc   :  { %v963_v52 = vsel %vm187_vm2, %v1911_v46, 0.0 }
 0x3cd   :  { %v1917_v53 = vpop.eup %1510  ;;  %1512 = vpow2.f32 %v828_v51  ;;  %964 = vadd.xlane.f32.xlu2 %v963_v52  ;;  %v1078_v41 = vmul.f32 1.442695, %v1076_v28 }
 0x3ce   :  { %v835_v22 = vsel %vm187_vm2, %v1917_v53, 0.0 }
 0x3cf   :  { %836 = vadd.xlane.f32.xlu0 %v835_v22 }
 0x3d0   :  { %v454_v58 = vpop.xlane.xlu2 %453 }
 0x3d1   :  { %1514 = vrcp.f32 %v454_v58  ;;  %v469_v30 = vand.u32 2147483648, %v454_v58  ;;  %v467_v33 = vand.u32 2147483647, %v454_v58  ;;  %vm463_vm7 = vweird.f32 %v454_v58 }
 0x3d2   :  { %1516 = vpow2.f32 %v702_v54  ;;  %v1075_v42 = vpop.xlane.xlu1 %1074  ;;  %v235_v54 = vmul.f32 %v1823_v29, %v234_v36 }
 0x3d3   :  { %v1931_v61 = vpop.eup %1512  ;;  %1518 = vrcp.f32 %v1919_v55  ;;  %v470_v43 = vor.u32 1.1754944e-38, %v469_v30  ;;  %vm468_vm9 = vcmp.eq.f32.partialorder %v467_v33, 8.507059e+37  ;;  %v1077_v57 = vsub.f32 %v1872_v35, %v1075_v42 }
 0x3d4   :  { %v832_v0 = vsel %vm187_vm2, %v1931_v61, 0.0 }
 0x3d5   :  { %833 = vadd.xlane.f32.xlu1 %v832_v0  ;;  %v1459_v1 = vpop.permute.xlu0 %1458  ;;  %v1080_v62 = vmul.f32 1.442695, %v1077_v57 }
 0x3d6   :  { %v1460_v5 = vunpack.i.l.bf16 %v1459_v1  ;;  %v1461_v17 = vunpack.i.h.bf16 %v1459_v1 }
 0x3d7   :  { %v1515_v13 = vpop.eup %1514 }
 0x3d8   :  { %v1941_v14 = vpop.eup %1516  ;;  %v459_v16 = vmul.f32 %v1515_v13, %v454_v58  ;;  %v1944_v12 = vpop.xlane.xlu2 %456  ;;  %388 = vmatpush.msrb.mxu2 %v1460_v5  ;;  %vm464_vm5 = vweird.f32 %v1515_v13 }
 0x3d9   :  { %1520 = vrcp.f32 %v1944_v12  ;;  %v1954_v27 = vpop.eup %1518  ;;  %v707_v31 = vsel %vm187_vm2, %v1941_v14, 0.0  ;;  %vm465_vm8 = vmor %vm463_vm7, %vm464_vm5  ;;  %v484_v58 = vand.u32 2147483648, %v1944_v12  ;;  %v482_v29 = vand.u32 2147483647, %v1944_v12 }
 0x3da   :  { %1522 = vpow2.f32 %v956_v15  ;;  %v460_v9 = vsub.f32 1.0, %v459_v16  ;;  %389 = vmatpush.msrb.mxu2 %v1461_v17  ;;  %v711_v34 = vmul.f32 %v1954_v27, %v1919_v55  ;;  %vm478_vm11 = vweird.f32 %v1944_v12 }
 0x3db   :  { %1384 = vmatmul.msk.f32.vlgmr.msrb.gmra.mxu2 %vm187_vm2, %v220_v21  ;;  %1524 = vpow2.f32 %v1078_v41  ;;  %v485_v4 = vor.u32 1.1754944e-38, %v484_v58  ;;  %vm483_vm13 = vcmp.eq.f32.partialorder %v482_v29, 8.507059e+37  ;;  %vm716_vm14 = vweird.f32 %v1954_v27 }
 0x3dc   :  { %v461_v32 = vmul.f32 %v1515_v13, %v460_v9  ;;  %v712_v22 = vsub.f32 1.0, %v711_v34  ;;  %1526 = vpow2.f32 %v1080_v62  ;;  %v719_v16 = vand.u32 2147483647, %v1919_v55  ;;  %vm717_vm3 = vmor %vm715_vm15, %vm716_vm14  ;;  %v142_v9 = vpop.f32.mrf.mxu2 }
 0x3dd   :  { %708 = vadd.xlane.f32.xlu1 %v707_v31  ;;  %v65_v21 = vperm.slane %v1659_v6, 2 }
 0x3de   :  { %v462_v63 = vadd.f32 %v1515_v13, %v461_v32  ;;  %vm720_vm4 = vcmp.eq.f32.partialorder %v719_v16, 8.507059e+37 }
 0x3df   :  { %v1521_v39 = vpop.eup %1520  ;;  %v143_v31 = vadd.f32 %v142_v9, %v65_v21 }
 0x3e0   :  { %v1965_v44 = vpop.eup %1522  ;;  %v466_v45 = vsel %vm465_vm8, %v1515_v13, %v462_v63  ;;  %v474_v47 = vmul.f32 %v1521_v39, %v1944_v12  ;;  %v1464_v50 = vpop.permute.xlu2 %1463  ;;  %vm479_vm10 = vweird.f32 %v1521_v39 }
 0x3e1   :  { %v471_v51 = vsel %vm468_vm9, %v470_v43, %v466_v45  ;;  %v1465_v52 = vunpack.i.l.bf16 %v1464_v50  ;;  %v960_v59 = vsel %vm187_vm2, %v1965_v44, 0.0  ;;  %v1466_v60 = vunpack.i.h.bf16 %v1464_v50  ;;  %vm480_vm12 = vmor %vm478_vm11, %vm479_vm10  ;;  %v1979_v15 = vpop.eup %1524 }
 0x3e2   :  { %v475_v56 = vsub.f32 1.0, %v474_v47  ;;  %v472_v48 = vmul.f32 %v1867_v49, %v471_v51  ;;  %v713_v49 = vmul.f32 %v1954_v27, %v712_v22  ;;  %v1082_v12 = vsel %vm187_vm2, %v1979_v15, 0.0  ;;  %v1992_v3 = vpop.eup %1526 }
 0x3e3   :  { %1385 = vmatmul.msk.f32.gmra.mxu2 %vm187_vm2, %v235_v54  ;;  %v1085_v19 = vsel %vm187_vm2, %v1992_v3, 0.0 }
 0x3e4   :  { %v476_v20 = vmul.f32 %v1521_v39, %v475_v56  ;;  %638 = vmatpush.msra.mxu2 %v1465_v52  ;;  %1390 = vmatmul.msk.f32.vlgmr.msra.gmra.mxu0 %vm187_vm2, %v472_v48  ;;  %v714_v37 = vadd.f32 %v1954_v27, %v713_v49 }
 0x3e5   :  { %961 = vadd.xlane.f32.xlu1 %v960_v59 }
 0x3e6   :  { %639 = vmatpush.msra.mxu2 %v1466_v60  ;;  %v477_v35 = vadd.f32 %v1521_v39, %v476_v20  ;;  %v718_v17 = vsel %vm717_vm3, %v1954_v27, %v714_v37  ;;  %v140_v27 = vadd.f32 %v139_v18, %v65_v21 }
 0x3e8   :  { %v1469_v0 = vpop.permute.xlu2 %1468  ;;  %v481_v1 = vsel %vm480_vm12, %v1521_v39, %v477_v35  ;;  %v1477_v6 = vpack.i.bf16 %v140_v27, %v143_v31 }
 0x3e9   :  { %v1470_v10 = vunpack.i.l.bf16 %v1469_v0  ;;  %v486_v5 = vsel %vm483_vm13, %v485_v4, %v481_v1  ;;  %v1471_v11 = vunpack.i.h.bf16 %v1469_v0 }
 0x3ea   :  { %v487_v13 = vmul.f32 %v1876_v2, %v486_v5  ;;  %v722_v2 = vor.u32 1.1754944e-38, %v721_v40 }
 0x3eb   :  { %894 = vmatpush.msrb.mxu2 %v1470_v10 }
 0x3ec   :  { %1391 = vmatmul.msk.f32.gmra.mxu0 %vm187_vm2, %v487_v13  ;;  %v723_v28 = vsel %vm720_vm4, %v722_v2, %v718_v17 }
 0x3ed   :  { %1083 = vadd.xlane.f32.xlu1 %v1082_v12  ;;  %895 = vmatpush.msrb.mxu2 %v1471_v11  ;;  %v724_v26 = vmul.f32 %v1835_v38, %v723_v28 }
 0x3f0   :  { %v1474_v25 = vpop.permute.xlu2 %1473 }
 0x3f1   :  { %v1475_v55 = vunpack.i.l.bf16 %v1474_v25  ;;  %v1476_v30 = vunpack.i.h.bf16 %v1474_v25 }
 0x3f3   :  { %766 = vmatpush.msrb.mxu0 %v1475_v55 }
 0x3f5   :  { %767 = vmatpush.msrb.mxu0 %v1476_v30  ;;  %1086 = vadd.xlane.f32.xlu1 %v1085_v19 }
 0x3f6   :  { %1402 = vmatmul.msk.f32.vlgmr.msrb.gmra.mxu0 %vm187_vm2, %v724_v26 }
 0x3f7   :  { %1016 = vmatpush.msra.mxu0 %v143_v31 }
 0x3f9   :  { %1017 = vmatpush.msra.mxu0 %v140_v27 }
 0x40e   :  { %1478 = vrot.lane.b32.xlu1 %v1477_v6, %s1617_s26 }
 0x42a   :  { %v576_v32 = vpop.xlane.xlu1 %575 }
 0x42b   :  { %1528 = vrcp.f32 %v576_v32  ;;  %v591_v39 = vand.u32 2147483648, %v576_v32  ;;  %v589_v38 = vand.u32 2147483647, %v576_v32  ;;  %vm585_vm6 = vweird.f32 %v576_v32 }
 0x42d   :  { %v592_v42 = vor.u32 1.1754944e-38, %v591_v39  ;;  %vm590_vm8 = vcmp.eq.f32.partialorder %v589_v38, 8.507059e+37 }
 0x431   :  { %v1529_v33 = vpop.eup %1528 }
 0x432   :  { %v581_v34 = vmul.f32 %v1529_v33, %v576_v32  ;;  %v579_v63 = vpop.xlane.xlu1 %578  ;;  %vm586_vm5 = vweird.f32 %v1529_v33 }
 0x433   :  { %1530 = vrcp.f32 %v579_v63  ;;  %vm587_vm7 = vmor %vm585_vm6, %vm586_vm5  ;;  %v606_v56 = vand.u32 2147483648, %v579_v63  ;;  %v604_v48 = vand.u32 2147483647, %v579_v63  ;;  %vm600_vm10 = vweird.f32 %v579_v63 }
 0x434   :  { %v582_v36 = vsub.f32 1.0, %v581_v34 }
 0x435   :  { %v607_v58 = vor.u32 1.1754944e-38, %v606_v56  ;;  %vm605_vm12 = vcmp.eq.f32.partialorder %v604_v48, 8.507059e+37 }
 0x436   :  { %v583_v41 = vmul.f32 %v1529_v33, %v582_v36 }
 0x438   :  { %v584_v43 = vadd.f32 %v1529_v33, %v583_v41 }
 0x439   :  { %v1531_v45 = vpop.eup %1530 }
 0x43a   :  { %v588_v47 = vsel %vm587_vm7, %v1529_v33, %v584_v43  ;;  %v596_v50 = vmul.f32 %v1531_v45, %v579_v63  ;;  %vm601_vm9 = vweird.f32 %v1531_v45 }
 0x43b   :  { %v593_v51 = vsel %vm590_vm8, %v592_v42, %v588_v47  ;;  %vm602_vm11 = vmor %vm600_vm10, %vm601_vm9 }
 0x43c   :  { %v597_v52 = vsub.f32 1.0, %v596_v50  ;;  %v594_v54 = vmul.f32 %v1892_v23, %v593_v51 }
 0x43e   :  { %v598_v22 = vmul.f32 %v1531_v45, %v597_v52  ;;  %1396 = vmatmul.msk.f32.vlgmr.msra.gmra.mxu2 %vm187_vm2, %v594_v54 }
 0x440   :  { %v599_v57 = vadd.f32 %v1531_v45, %v598_v22  ;;  %v2003_v62 = vpop.xlane.xlu2 %964 }
 0x442   :  { %v837_v59 = vpop.xlane.xlu0 %836  ;;  %v603_v20 = vsel %vm602_vm11, %v1531_v45, %v599_v57 }
 0x443   :  { %1532 = vrcp.f32 %v837_v59  ;;  %v608_v60 = vsel %vm605_vm12, %v607_v58, %v603_v20  ;;  %v864_v9 = vand.u32 2147483648, %v837_v59  ;;  %vm858_vm5 = vweird.f32 %v837_v59 }
 0x444   :  { %v609_v29 = vmul.f32 %v1899_v24, %v608_v60  ;;  %v862_v31 = vand.u32 2147483647, %v837_v59 }
 0x445   :  { %v865_v32 = vor.u32 1.1754944e-38, %v864_v9 }
 0x446   :  { %1397 = vmatmul.msk.f32.gmra.mxu2 %vm187_vm2, %v609_v29  ;;  %vm863_vm9 = vcmp.eq.f32.partialorder %v862_v31, 8.507059e+37  ;;  %v990_v29 = vand.u32 2147483647, %v2003_v62 }
 0x448   :  { %v834_v23 = vpop.xlane.xlu1 %833 }
 0x449   :  { %v1533_v49 = vpop.eup %1532  ;;  %1534 = vrcp.f32 %v834_v23  ;;  %v849_v5 = vand.u32 2147483648, %v834_v23  ;;  %v847_v24 = vand.u32 2147483647, %v834_v23  ;;  %vm843_vm14 = vweird.f32 %v834_v23 }
 0x44a   :  { %v854_v35 = vmul.f32 %v1533_v49, %v837_v59  ;;  %vm859_vm3 = vweird.f32 %v1533_v49 }
 0x44b   :  { %v850_v16 = vor.u32 1.1754944e-38, %v849_v5  ;;  %vm848_vm4 = vcmp.eq.f32.partialorder %v847_v24, 8.507059e+37  ;;  %vm860_vm6 = vmor %vm858_vm5, %vm859_vm3 }
 0x44c   :  { %v855_v4 = vsub.f32 1.0, %v854_v35 }
 0x44e   :  { %v856_v37 = vmul.f32 %v1533_v49, %v855_v4 }
 0x44f   :  { %v1535_v18 = vpop.eup %1534 }
 0x450   :  { %v839_v0 = vmul.f32 %v1535_v18, %v834_v23  ;;  %v709_v1 = vpop.xlane.xlu1 %708  ;;  %vm844_vm13 = vweird.f32 %v1535_v18  ;;  %v857_v21 = vadd.f32 %v1533_v49, %v856_v37 }
 0x451   :  { %1536 = vrcp.f32 %v709_v1  ;;  %vm845_vm15 = vmor %vm843_vm14, %vm844_vm13  ;;  %v736_v26 = vand.u32 2147483648, %v709_v1  ;;  %v734_v33 = vand.u32 2147483647, %v709_v1  ;;  %vm730_vm8 = vweird.f32 %v709_v1 }
 0x452   :  { %v840_v10 = vsub.f32 1.0, %v839_v0  ;;  %1538 = vrcp.f32 %v2003_v62  ;;  %v861_v27 = vsel %vm860_vm6, %v1533_v49, %v857_v21  ;;  %vm991_vm6 = vcmp.eq.f32.partialorder %v990_v29, 8.507059e+37 }
 0x453   :  { %v866_v36 = vsel %vm863_vm9, %v865_v32, %v861_v27  ;;  %vm735_vm11 = vcmp.eq.f32.partialorder %v734_v33, 8.507059e+37 }
 0x454   :  { %v841_v13 = vmul.f32 %v1535_v18, %v840_v10  ;;  %v867_v47 = vmul.f32 %v1917_v53, %v866_v36 }
 0x456   :  { %v842_v40 = vadd.f32 %v1535_v18, %v841_v13 }
 0x457   :  { %v1537_v11 = vpop.eup %1536 }
 0x458   :  { %v846_v12 = vsel %vm845_vm15, %v1535_v18, %v842_v40  ;;  %v726_v17 = vmul.f32 %v1537_v11, %v709_v1  ;;  %v962_v2 = vpop.xlane.xlu1 %961  ;;  %v2006_v25 = vpop.eup %1538  ;;  %vm731_vm7 = vweird.f32 %v1537_v11 }
 0x459   :  { %v851_v28 = vsel %vm848_vm4, %v850_v16, %v846_v12  ;;  %1540 = vrcp.f32 %v962_v2  ;;  %v982_v6 = vmul.f32 %v2006_v25, %v2003_v62  ;;  %vm732_vm10 = vmor %vm730_vm8, %vm731_vm7  ;;  %v977_v50 = vand.u32 2147483648, %v962_v2 }
 0x45a   :  { %v727_v55 = vsub.f32 1.0, %v726_v17  ;;  %v852_v30 = vmul.f32 %v1931_v61, %v851_v28  ;;  %v737_v61 = vor.u32 1.1754944e-38, %v736_v26  ;;  %v975_v54 = vand.u32 2147483647, %v962_v2 }
 0x45b   :  { %v983_v43 = vsub.f32 1.0, %v982_v6  ;;  %vm971_vm13 = vweird.f32 %v962_v2  ;;  %v978_v48 = vor.u32 1.1754944e-38, %v977_v50  ;;  %vm987_vm3 = vweird.f32 %v2006_v25 }
 0x45c   :  { %v728_v19 = vmul.f32 %v1537_v11, %v727_v55  ;;  %1408 = vmatmul.msk.f32.vlgmr.msrb.gmra.mxu2 %vm187_vm2, %v852_v30  ;;  %vm976_vm15 = vcmp.eq.f32.partialorder %v975_v54, 8.507059e+37  ;;  %vm986_vm4 = vweird.f32 %v2003_v62 }
 0x45d   :  { %v984_v22 = vmul.f32 %v2006_v25, %v983_v43  ;;  %vm988_vm5 = vmor %vm986_vm4, %vm987_vm3 }
 0x45e   :  { %v729_v34 = vadd.f32 %v1537_v11, %v728_v19  ;;  %v391_v19 = vpop.f32.mrf.mxu2 }
 0x45f   :  { %v1541_v63 = vpop.eup %1540  ;;  %v985_v58 = vadd.f32 %v2006_v25, %v984_v22 }
 0x460   :  { %v967_v39 = vmul.f32 %v1541_v63, %v962_v2  ;;  %v1084_v41 = vpop.xlane.xlu1 %1083  ;;  %v733_v38 = vsel %vm732_vm10, %v1537_v11, %v729_v34  ;;  %vm972_vm12 = vweird.f32 %v1541_v63 }
 0x461   :  { %v738_v42 = vsel %vm735_vm11, %v737_v61, %v733_v38  ;;  %1542 = vrcp.f32 %v1084_v41  ;;  %vm973_vm14 = vmor %vm971_vm13, %vm972_vm12  ;;  %v989_v23 = vsel %vm988_vm5, %v2006_v25, %v985_v58  ;;  %v1099_v37 = vand.u32 2147483648, %v1084_v41  ;;  %v511_v27 = vpop.f32.mrf.mxu0 }
 0x462   :  { %v968_v45 = vsub.f32 1.0, %v967_v39  ;;  %v739_v51 = vmul.f32 %v1941_v14, %v738_v42  ;;  %v992_v14 = vand.u32 2147483648, %v2003_v62  ;;  %vm1093_vm8 = vweird.f32 %v1084_v41 }
 0x463   :  { %v1097_v13 = vand.u32 2147483647, %v1084_v41  ;;  %v1100_v11 = vor.u32 1.1754944e-38, %v1099_v37 }
 0x464   :  { %v969_v52 = vmul.f32 %v1541_v63, %v968_v45  ;;  %1409 = vmatmul.msk.f32.gmra.mxu2 %vm187_vm2, %v867_v47  ;;  %1403 = vmatmul.msk.f32.gmra.mxu0 %vm187_vm2, %v739_v51  ;;  %v993_v49 = vor.u32 1.1754944e-38, %v992_v14  ;;  %v47_v14 = vld [vmem:[#allocation4 + $0xb8] sm:$0x3] }
 0x465   :  { %vm1098_vm10 = vcmp.eq.f32.partialorder %v1097_v13, 8.507059e+37 }
 0x466   :  { %v970_v56 = vadd.f32 %v1541_v63, %v969_v52  ;;  %v994_v18 = vsel %vm991_vm6, %v993_v49, %v989_v23  ;;  %v394_v26 = vpop.f32.mrf.mxu2  ;;  %vm1308_vm6 = vcmask 195584  }
 0x467   :  { %v1543_v60 = vpop.eup %1542  ;;  %v995_v1 = vmul.f32 %v1911_v46, %v994_v18  ;;  %v1215_v18 = vld [vmem:[#allocation4 + $0x60] sm:$0xff] }
 0x468   :  { %v974_v57 = vsel %vm973_vm14, %v1541_v63, %v970_v56  ;;  %v1087_v59 = vpop.xlane.xlu1 %1086  ;;  %v1089_v35 = vmul.f32 %v1543_v60, %v1084_v41  ;;  %vm1094_vm7 = vweird.f32 %v1543_v60  ;;  %v1157_v63 = vld [vmem:[#allocation4 + $0x110] ss:$0 sm:$0xff]  ;;  %v392_v41 = vadd.f32 %v391_v19, %v1808_v7  ;;  %v1188_v7 = vld [vmem:[#allocation4 + $0xd8] sm:$0xff] }
 0x469   :  { %v979_v53 = vsel %vm976_vm15, %v978_v48, %v974_v57  ;;  %1544 = vrcp.f32 %v1087_v59  ;;  %vm1095_vm9 = vmor %vm1093_vm8, %vm1094_vm7  ;;  %v1114_v46 = vand.u32 2147483648, %v1087_v59  ;;  %vm1108_vm12 = vweird.f32 %v1087_v59  ;;  %v514_v32 = vpop.f32.mrf.mxu0  ;;  %1159 = vrot.lane.b32.xlu0 %v1157_v63, %s1611_s22 }
 0x46a   :  { %v980_v20 = vmul.f32 %v1965_v44, %v979_v53  ;;  %v1090_v4 = vsub.f32 1.0, %v1089_v35  ;;  %v1112_v9 = vand.u32 2147483647, %v1087_v59  ;;  %v517_v38 = vadd.f32 %v511_v27, %v392_v41  ;;  %v1216_v35 = vld [vmem:[#allocation4 + $0xa0] sm:$0xff] }
 0x46b   :  { %v1115_v55 = vor.u32 1.1754944e-38, %v1114_v46  ;;  %vm1271_vm15 = vcmask 1043456  }
 0x46c   :  { %1414 = vmatmul.msk.f32.vlgmr.msra.gmra.mxu0 %vm187_vm2, %v980_v20  ;;  %v1091_v44 = vmul.f32 %v1543_v60, %v1090_v4  ;;  %vm1113_vm14 = vcmp.eq.f32.partialorder %v1112_v9, 8.507059e+37  ;;  %v1185_v20 = vld [vmem:[#allocation4 + $0x18] sm:$0xff]  ;;  %v1214_v4 = vld [vmem:[#allocation4 + $0x20] sm:$0xff] }
 0x46e   :  { %v1092_v5 = vadd.f32 %v1543_v60, %v1091_v44 }
 0x46f   :  { %v1545_v0 = vpop.eup %1544 }
 0x470   :  { %v1104_v10 = vmul.f32 %v1545_v0, %v1087_v59  ;;  %v1096_v24 = vsel %vm1095_vm9, %v1543_v60, %v1092_v5  ;;  %vm1109_vm11 = vweird.f32 %v1545_v0  ;;  %v1186_v59 = vld [vmem:[#allocation4 + $0x58] sm:$0xff]  ;;  %v1217_v60 = vld [vmem:[#allocation4 + $0xe0] sm:$0xff] }
 0x471   :  { %v1101_v12 = vsel %vm1098_vm10, %v1100_v11, %v1096_v24  ;;  %vm1110_vm13 = vmor %vm1108_vm12, %vm1109_vm11  ;;  %1234 = vmatpush.msrb.mxu0 %v1217_v60  ;;  %v1218_v5 = vld [vmem:[#allocation4 + $0x120] ss:$0 sm:$0xff]  ;;  %vm1360_vm11 = vcmask 66624  }
 0x472   :  { %v1105_v62 = vsub.f32 1.0, %v1104_v10  ;;  %v1102_v25 = vmul.f32 %v1979_v15, %v1101_v12 }
 0x473   :  { %v769_v15 = vpop.f32.mrf.mxu0  ;;  %1235 = vmatpush.msrb.mxu0 %v1216_v35 }
 0x474   :  { %1415 = vmatmul.msk.f32.gmra.mxu0 %vm187_vm2, %v995_v1  ;;  %v1106_v40 = vmul.f32 %v1545_v0, %v1105_v62 }
 0x475   :  { %1236 = vmatpush.msrb.mxu0 %v1215_v18 }
 0x476   :  { %v1107_v2 = vadd.f32 %v1545_v0, %v1106_v40 }
 0x477   :  { %1237 = vmatpush.msrb.mxu0 %v1214_v4 }
 0x478   :  { %v1111_v28 = vsel %vm1110_vm13, %v1545_v0, %v1107_v2  ;;  %v1189_v0 = vld [vmem:[#allocation4 + $0x118] ss:$0 sm:$0xff] }
 0x479   :  { %v1116_v30 = vsel %vm1113_vm14, %v1115_v55, %v1111_v28 }
 0x47a   :  { %v1117_v31 = vmul.f32 %v1992_v3, %v1116_v30  ;;  %v395_v3 = vadd.f32 %v394_v26, %v1810_v8  ;;  %v1187_v8 = vld [vmem:[#allocation4 + $0x98] sm:$0xff] }
 0x47c   :  { %v518_v43 = vadd.f32 %v514_v32, %v395_v3  ;;  %v1303_v32 = vld [vmem:[#allocation4 + $0xb0] sm:$0xff] }
 0x480   :  { %v1479_v16 = vpop.permute.xlu1 %1478 }
 0x481   :  { %v1480_v17 = vunpack.i.l.bf16 %v1479_v16  ;;  %v1481_v21 = vunpack.i.h.bf16 %v1479_v16 }
 0x483   :  { %1146 = vmatpush.msra.mxu2 %v1480_v17  ;;  %v1267_v17 = vld [vmem:[#allocation4 + $0x28] sm:$0xf] }
 0x484   :  { %1425 = vmatpush.msk.msrb.mxu1 %vm1271_vm15, %v1267_v17 }
 0x485   :  { %1147 = vmatpush.msra.mxu2 %v1481_v21 }
 0x486   :  { %1420 = vmatmul.msk.f32.vlgmr.msra.gmra.mxu2 %vm187_vm2, %v1102_v25 }
 0x487   :  { %1324 = vmatpush.msrb.mxu2 %v1303_v32 }
 0x48e   :  { %1421 = vmatmul.msk.f32.gmra.mxu2 %vm187_vm2, %v1117_v31 }
 0x4c1   :  { %v641_v6 = vpop.f32.mrf.mxu2 }
 0x4c2   :  { %v647_v42 = vadd.f32 %v641_v6, %v517_v38 }
 0x4c4   :  { %v775_v52 = vadd.f32 %v769_v15, %v647_v42  ;;  %v1301_v15 = vld [vmem:[#allocation4 + $0x30] sm:$0xff] }
 0x4c9   :  { %v644_v33 = vpop.f32.mrf.mxu2 }
 0x4ca   :  { %v648_v47 = vadd.f32 %v644_v33, %v518_v43  ;;  %v1302_v33 = vld [vmem:[#allocation4 + $0x70] sm:$0xff] }
 0x4cb   :  { %1325 = vmatpush.msrb.mxu2 %v1302_v33 }
 0x4cd   :  { %1326 = vmatpush.msrb.mxu2 %v1301_v15 }
 0x4db   :  { %v1160_v29 = vpop.permute.xlu0 %1159 }
 0x4df   :  { %v897_v34 = vpop.f32.mrf.mxu2 }
 0x4e0   :  { %v903_v22 = vadd.f32 %v897_v34, %v775_v52 }
 0x4e1   :  { %v772_v36 = vpop.f32.mrf.mxu0 }
 0x4e2   :  { %v776_v50 = vadd.f32 %v772_v36, %v648_v47 }
 0x4e7   :  { %v900_v61 = vpop.f32.mrf.mxu2 }
 0x4e8   :  { %v904_v54 = vadd.f32 %v900_v61, %v776_v50 }
 0x4e9   :  { %v1019_v39 = vpop.f32.mrf.mxu0 }
 0x4ea   :  { %v1025_v57 = vadd.f32 %v1019_v39, %v903_v22  ;;  %v1304_v39 = vld [vmem:[#allocation4 + $0x130] ss:$0 sm:$0xff] }
 0x4f1   :  { %v1022_v51 = vpop.f32.mrf.mxu0 }
 0x4f2   :  { %v1026_v56 = vadd.f32 %v1022_v51, %v904_v54 }
 0x509   :  { %v1149_v45 = vpop.f32.mrf.mxu2 }
 0x50a   :  { %v1155_v58 = vadd.f32 %v1149_v45, %v1025_v57 }
 0x511   :  { %v1152_v48 = vpop.f32.mrf.mxu2 }
 0x512   :  { %v1156_v53 = vadd.f32 %v1152_v48, %v1026_v56 }
 0x514   :  { %1179 = vmatpush.msra.mxu3 %v1156_v53 }
 0x516   :  { %1180 = vmatpush.msra.mxu3 %v1155_v58 }
 0x517   :  { %1422 = vmatmul.msk.f32.vlgmr.msra.gmra.mxu3 %vm187_vm2, %v47_v14  ;;  %vm1242_vm2 = vcmask 25600  }
 0x518   :  { %1205 = vmatpush.msrb.mxu3 %v1188_v7 }
 0x51a   :  { %1206 = vmatpush.msrb.mxu3 %v1187_v8 }
 0x51c   :  { %1207 = vmatpush.msrb.mxu3 %v1186_v59 }
 0x51e   :  { %1208 = vmatpush.msrb.mxu3 %v1185_v20 }
 0x59a   :  { %v1182_v23 = vpop.f32.mrf.mxu3 }
 0x59b   :  { %v1183_v49 = vadd.f32 %v1182_v23, %v1160_v29 }
 0x59d   :  { %1423 = vmatmul.msk.f32.vlgmr.msrb.gmra.mxu3 %vm69_vm0, %v1183_v49 }
 0x620   :  { %v1210_v1 = vpop.f32.mrf.mxu3 }
 0x621   :  { %v1211_v44 = vadd.f32 %v1210_v1, %v1189_v0 }
 0x623   :  { %v1213_v10 = vmax.f32 %v1211_v44, 0.0 }
 0x625   :  { %1424 = vmatmul.msk.f32.vlgmr.msrb.gmra.mxu0 %vm69_vm0, %v1213_v10 }
 0x6a2   :  { %v1239_v62 = vpop.f32.mrf.mxu0 }
 0x6a3   :  { %v1240_v37 = vadd.f32 %v1239_v62, %v1218_v5 }
 0x6a5   :  { %v1243_v13 = vsel %vm1242_vm2, %v1240_v37, -inf }
 0x6a6   :  { %1244 = vmax.xlane.f32.xlu0 %v1243_v13 }
 0x719   :  { %v1245_v24 = vpop.xlane.xlu0 %1244 }
 0x71a   :  { %v1246_v40 = vsub.f32 %v1240_v37, %v1245_v24 }
 0x71c   :  { %v1247_v11 = vmul.f32 1.442695, %v1246_v40 }
 0x71e   :  { %1546 = vpow2.f32 %v1247_v11 }
 0x724   :  { %v1547_v16 = vpop.eup %1546 }
 0x725   :  { %v1249_v12 = vsel %vm1242_vm2, %v1547_v16, 0.0 }
 0x726   :  { %1250 = vadd.xlane.f32.xlu1 %v1249_v12 }
 0x799   :  { %v1251_v2 = vpop.xlane.xlu1 %1250 }
 0x79a   :  { %1548 = vrcp.f32 %v1251_v2  ;;  %v1263_v9 = vand.u32 2147483648, %v1251_v2  ;;  %v1261_v55 = vand.u32 2147483647, %v1251_v2  ;;  %vm1257_vm3 = vweird.f32 %v1251_v2 }
 0x79c   :  { %v1264_v31 = vor.u32 1.1754944e-38, %v1263_v9  ;;  %vm1262_vm5 = vcmp.eq.f32.partialorder %v1261_v55, 8.507059e+37 }
 0x7a0   :  { %v1549_v46 = vpop.eup %1548 }
 0x7a1   :  { %v1253_v21 = vmul.f32 %v1549_v46, %v1251_v2  ;;  %vm1258_vm0 = vweird.f32 %v1549_v46 }
 0x7a2   :  { %vm1259_vm4 = vmor %vm1257_vm3, %vm1258_vm0 }
 0x7a3   :  { %v1254_v25 = vsub.f32 1.0, %v1253_v21 }
 0x7a5   :  { %v1255_v28 = vmul.f32 %v1549_v46, %v1254_v25 }
 0x7a7   :  { %v1256_v30 = vadd.f32 %v1549_v46, %v1255_v28 }
 0x7a9   :  { %v1260_v19 = vsel %vm1259_vm4, %v1549_v46, %v1256_v30 }
 0x7aa   :  { %v1265_v26 = vsel %vm1262_vm5, %v1264_v31, %v1260_v19 }
 0x7ab   :  { %v1266_v27 = vmul.f32 %v1547_v16, %v1265_v26 }
 0x7ad   :  { %1332 = vrot.lane.b32.xlu0 %v1266_v27, %s1628_s9  ;;  %1426 = vmatmul.msk.f32.vlgmr.msrb.gmra.mxu1 %vm151_vm1, %v1266_v27  ;;  %vm1335_vm1 = vcmask 58400  }
 0x81f   :  { %v1333_v38 = vpop.permute.xlu0 %1332 }
 0x82a   :  { %v1292_v6 = vpop.f32.mrf.mxu1 }
 0x82b   :  { %1296 = vrot.lane.b32.xlu2 %v1292_v6, %s1616_s25 }
 0x885   :  { %v1297_v34 = vpop.permute.xlu2 %1296 }
 0x886   :  { %v1299_v63 = vadd.f32 %v1297_v34, %v1211_v44 }
 0x888   :  { %v1300_v36 = vmax.f32 %v1299_v63, 0.0 }
 0x88a   :  { %1306 = vrot.lane.b32.xlu2 %v1300_v36, %s1617_s26 }
 0x8e4   :  { %v1307_v61 = vpop.permute.xlu2 %1306 }
 0x8e5   :  { %1427 = vmatmul.msk.f32.vlgmr.msrb.gmra.mxu2 %vm1308_vm6, %v1307_v61 }
 0x968   :  { %v1328_v41 = vpop.f32.mrf.mxu2 }
 0x969   :  { %v1329_v3 = vadd.f32 %v1328_v41, %v1304_v39 }
 0x96b   :  { %1331 = vst.msk [vmem:[%s2056_s2] sm:$0x3] %vm1242_vm2, %v1329_v3  ;;  %v1428_v43 = vmul.f32 -1.442695, %v1329_v3 }
 0x96c   :  { %1336 = vst.msk [vmem:[%s2056_s2] sm:$0x3] %vm1335_vm1, %v1333_v38 }
 0x96d   :  { %1550 = vpow2.f32 %v1428_v43 }
 0x973   :  { %v1551_v45 = vpop.eup %1550 }
 0x974   :  { %v1340_v42 = vadd.f32 1.0, %v1551_v45 }
 0x976   :  { %1552 = vrcp.f32 %v1340_v42  ;;  %v1352_v52 = vand.u32 2147483648, %v1340_v42  ;;  %v1350_v22 = vand.u32 2147483647, %v1340_v42  ;;  %vm1346_vm8 = vweird.f32 %v1340_v42 }
 0x978   :  { %v1353_v48 = vor.u32 1.1754944e-38, %v1352_v52  ;;  %vm1351_vm10 = vcmp.eq.f32.partialorder %v1350_v22, 8.507059e+37 }
 0x97c   :  { %v1553_v47 = vpop.eup %1552 }
 0x97d   :  { %v1342_v50 = vmul.f32 %v1553_v47, %v1340_v42  ;;  %vm1347_vm7 = vweird.f32 %v1553_v47 }
 0x97e   :  { %vm1348_vm9 = vmor %vm1346_vm8, %vm1347_vm7 }
 0x97f   :  { %v1343_v51 = vsub.f32 1.0, %v1342_v50 }
 0x981   :  { %v1344_v54 = vmul.f32 %v1553_v47, %v1343_v51 }
 0x983   :  { %v1345_v56 = vadd.f32 %v1553_v47, %v1344_v54 }
 0x985   :  { %v1349_v57 = vsel %vm1348_vm9, %v1553_v47, %v1345_v56 }
 0x986   :  { %v1354_v53 = vsel %vm1351_vm10, %v1353_v48, %v1349_v57 }
 0x987   :  { %1357 = vrot.lane.b32.xlu1 %v1354_v53, %s1628_s9 }
 0x9f9   :  { %v1358_v58 = vpop.permute.xlu1 %1357 }
 0x9fa   :  { %1361 = vst.msk [vmem:[%s2056_s2] sm:$0x3] %vm1360_vm11, %v1358_v58 }
 0x9fb   :  { %1366 = vsyncpa [#allocation3], 1 }
 0x9fc   :  { %1367 = vsyncpa [#allocation5], 1 }

</bundles_post_ra>
